<compile_context>
chip_gen: v7x
topology: tpu7x:2x2x1
jax: 0.10.0
libtpu: 0.0.40
codegen_flags: <defaults>
</compile_context>

<pallas_src>
import functools

import jax
import jax.numpy as jnp
from jax import lax
from jax.experimental import pallas as pl
from jax.experimental.pallas import tpu as pltpu


def _vmem_capacity_bytes(default=64 << 20):
    """Per-core VMEM capacity; falls back to the smallest current part (v7x)."""
    try:
        cap = getattr(pltpu.get_tpu_info(), "vmem_capacity_bytes", None)
        if cap:
            return int(cap)
    except Exception:
        pass
    return default


def _spatial_attn_kernel(w_ref, x_ref, o_ref, avg_ref, max_ref, *,
                         nb, cb, H, W, K, pad):
    """w_ref  : SMEM f32[2*K*K]    flattened conv weight, avg half pre-scaled by 1/C
       x_ref  : VMEM [nb, C, H*W]  lane-dense input batch block
       o_ref  : VMEM [nb, H*Wp]    lane-dense flat conv output (padded row stride)
       avg_ref/max_ref : VMEM f32[cb, Hp*Wp] flat zero-padded maps for one chunk
    """
    Wp = W + 2 * pad
    KK = K * K
    L = (H - 1) * Wp + W            # flat length covering all valid outputs
    n_chunks = nb // cb

    def chunk_body(c, carry):
        b0 = pl.multiple_of(c * cb, cb)

        # ---- channel reduce (lane-dense: last dim = H*W) -------------------
        xc = x_ref[pl.ds(b0, cb), :, :]                    # (cb, C, H*W)
        s = jnp.sum(xc.astype(jnp.float32), axis=1)        # channel sum  (f32)
        m = jnp.max(xc, axis=1).astype(jnp.float32)        # max in input dtype

        # ---- build flat zero-padded maps for this chunk --------------------
        # Dense full zero of the tiny (cb, Hp*Wp) scratch is cheaper than
        # masked border-strip stores in this lane-dense layout, and is safe
        # under megacore splitting of the batch grid axis.
        avg_ref[...] = jnp.zeros_like(avg_ref)
        max_ref[...] = jnp.zeros_like(max_ref)
        for h in range(H):
            dst = (pad + h) * Wp + pad
            src = h * W
            avg_ref[:, dst:dst + W] = s[:, src:src + W]
            max_ref[:, dst:dst + W] = m[:, src:src + W]

        # ---- K*K conv: static lane-offset taps, vreg-resident accumulators --
        acc_a = jnp.zeros((cb, L), jnp.float32)
        acc_m = jnp.zeros((cb, L), jnp.float32)
        for kh in range(K):
            for kw in range(K):
                off = kh * Wp + kw
                wa = w_ref[kh * K + kw]          # SMEM scalar (avg weight / C)
                wm = w_ref[KK + kh * K + kw]     # SMEM scalar (max weight)
                acc_a = acc_a + wa * avg_ref[:, off:off + L]
                acc_m = acc_m + wm * max_ref[:, off:off + L]

        y = jax.nn.sigmoid(acc_a + acc_m)
        o_ref[pl.ds(b0, cb), pl.ds(0, L)] = y.astype(o_ref.dtype)
        return carry

    lax.fori_loop(0, n_chunks, chunk_body, 0)

    # Deterministic (and later discarded) tail lanes of the padded output slab.
    o_ref[:, L:] = jnp.zeros((nb, H * Wp - L), o_ref.dtype)


def spatial_attention(x, conv_weight, kernel_size=7):
    """x: [N, C, H, W]; conv_weight: [1, 2, K, K] (OIHW) -> [N, 1, H, W]."""
    assert kernel_size in (3, 7), "kernel size must be 3 or 7"
    pad = 3 if kernel_size == 7 else 1
    K = kernel_size
    N, C, H, W = x.shape
    Wp, Hp = W + 2 * pad, H + 2 * pad
    HW, HWp, FLAT = H * W, H * Wp, Hp * Wp

    # Fold the 1/C of the channel mean into the avg-branch weights so the
    # kernel only needs a channel SUM.  Flatten into a 1-D SMEM scalar table.
    w = conv_weight.astype(jnp.float32).reshape(2, K * K)
    w = w * jnp.array([[1.0 / C], [1.0]], jnp.float32)
    w_flat = w.reshape(-1)                                  # (2*K*K,)

    # ---- generation-aware batch-block sizing --------------------------------
    itemsize = x.dtype.itemsize
    # 2x double-buffer for input+output blocks, times 2 for layout/padding slack.
    per_sample = 2 * (2 * C * HW * itemsize + 2 * HWp * itemsize)
    vmem_cap = _vmem_capacity_bytes()
    budget = max(4 << 20, (vmem_cap // 2) - (6 << 20))      # headroom for scratch
    nb = max(1, min(N, budget // max(1, per_sample)))
    if nb >= 8:
        nb = (nb // 8) * 8        # whole 8-row sublane chunks inside the kernel
        cb = 8
    else:
        cb = nb
    grid = (pl.cdiv(N, nb),)      # ragged tail block handled by Pallas clipping

    need = per_sample * nb + (4 << 20)
    cap = vmem_cap // 2 if need <= vmem_cap // 2 else int(vmem_cap * 0.9)
    vmem_limit = int(min(max(need, 32 << 20), cap))

    kernel = functools.partial(_spatial_attn_kernel,
                               nb=nb, cb=cb, H=H, W=W, K=K, pad=pad)

    x_flat = x.reshape(N, C, HW)                            # free metadata reshape

    out_flat = pl.pallas_call(
        kernel,
        out_shape=jax.ShapeDtypeStruct((N, HWp), x.dtype),
        grid=grid,
        in_specs=[
            pl.BlockSpec(memory_space=pltpu.MemorySpace.SMEM),   # conv weights
            pl.BlockSpec((nb, C, HW), lambda b: (b, 0, 0)),      # x batch block
        ],
        out_specs=pl.BlockSpec((nb, HWp), lambda b: (b, 0)),
        scratch_shapes=[
            pltpu.VMEM((cb, FLAT), jnp.float32),   # flat padded channel-mean map
            pltpu.VMEM((cb, FLAT), jnp.float32),   # flat padded channel-max map
        ],
        compiler_params=pltpu.CompilerParams(
            dimension_semantics=("parallel",),
            vmem_limit_bytes=vmem_limit,
        ),
    )(w_flat, x_flat)

    # Strip the Wp-W padding columns (cheap XLA slice) and restore NCHW.
    out = out_flat.reshape(N, H, Wp)[:, :, :W]
    return out.reshape(N, 1, H, W)


def _reference(x, conv_weight, kernel_size=7):
    pad = 3 if kernel_size == 7 else 1
    avg_out = jnp.mean(x, axis=1, keepdims=True)
    max_out = jnp.max(x, axis=1, keepdims=True)
    cat = jnp.concatenate([avg_out, max_out], axis=1)
    y = lax.conv_general_dilated(
        cat, conv_weight, window_strides=(1, 1),
        padding=[(pad, pad), (pad, pad)],
        dimension_numbers=("NCHW", "OIHW", "NCHW"))
    return jax.nn.sigmoid(y)


if __name__ == "__main__":
    key = jax.random.PRNGKey(0)
    kx, k_w = jax.random.split(key)

    # Small shapes consistent with the module: x is NCHW.
    N, C, H, W = 2, 4, 16, 16
    K = 7
    x = jax.random.normal(kx, (N, C, H, W), dtype=jnp.float32)
    # Deterministic synthetic conv weight (Conv2d(2, 1, 7, bias=False)).
    fan_in = 2 * K * K
    conv_weight = jax.random.uniform(
        k_w, (1, 2, K, K), dtype=jnp.float32,
        minval=-1.0, maxval=1.0) * (1.0 / jnp.sqrt(fan_in))

    out = spatial_attention(x, conv_weight, kernel_size=K)
    out = jax.block_until_ready(out)

    ref = _reference(x, conv_weight, kernel_size=K)
    assert out.shape == (N, 1, H, W)
    assert jnp.allclose(out, ref, atol=1e-5, rtol=1e-5), "mismatch vs reference"

    print("KERNEL_OK")
</pallas_src>

<mosaic_0001>
module attributes {stable_mosaic.version = 11 : i64} {
  func.func @_spatial_attn_kernel(%arg0: i32, %arg1: memref<98xf32, #tpu.memory_space<smem>>, %arg2: memref<2x4x256xf32, #tpu.memory_space<vmem>>, %arg3: memref<2x352xf32, #tpu.memory_space<vmem>>, %arg4: memref<2x484xf32, #tpu.memory_space<vmem>>, %arg5: memref<2x484xf32, #tpu.memory_space<vmem>>) attributes {dimension_semantics = [#tpu.dimension_semantics<parallel>], iteration_bounds = array<i64: 1>, scalar_prefetch = 0 : i64, scratch_operands = 2 : i64, tpu.core_type = #tpu.core_type<tc>, window_params = [{transform_indices = @transform_0, window_bounds = array<i64: 98>}, {transform_indices = @transform_1, window_bounds = array<i64: 2, 4, 256>}, {transform_indices = @transform_2, window_bounds = array<i64: 2, 352>}]} {
    %c0_i32 = arith.constant 0 : i32
    %c2_i32 = arith.constant 2 : i32
    %0 = arith.muli %c0_i32, %c2_i32 : i32
    %1 = tpu.assume_multiple %0, 2 : i32
    %2 = arith.index_cast %1 : i32 to index
    %c0 = arith.constant 0 : index
    %c0_0 = arith.constant 0 : index
    %3 = vector.load %arg2[%2, %c0, %c0_0] : memref<2x4x256xf32, #tpu.memory_space<vmem>>, vector<2x4x256xf32>
    %cst = arith.constant dense<0.000000e+00> : vector<2x256xf32>
    %4 = vector.multi_reduction <add>, %3, %cst [1] : vector<2x4x256xf32> to vector<2x256xf32>
    %cst_1 = arith.constant dense<0xFF800000> : vector<2x256xf32>
    %5 = vector.multi_reduction <maximumf>, %3, %cst_1 [1] : vector<2x4x256xf32> to vector<2x256xf32>
    %cst_2 = arith.constant 0.000000e+00 : f32
    %6 = vector.broadcast %cst_2 : f32 to vector<2x484xf32>
    %c0_3 = arith.constant 0 : index
    %c0_4 = arith.constant 0 : index
    %7 = vector.load %arg4[%c0_3, %c0_4] : memref<2x484xf32, #tpu.memory_space<vmem>>, vector<2x484xf32>
    tpu.vector_store %arg4[%c0_3, %c0_4], %6 {strides = array<i32>} : memref<2x484xf32, #tpu.memory_space<vmem>>, vector<2x484xf32>,
    %cst_5 = arith.constant 0.000000e+00 : f32
    %8 = vector.broadcast %cst_5 : f32 to vector<2x484xf32>
    %c0_6 = arith.constant 0 : index
    %c0_7 = arith.constant 0 : index
    %9 = vector.load %arg5[%c0_6, %c0_7] : memref<2x484xf32, #tpu.memory_space<vmem>>, vector<2x484xf32>
    tpu.vector_store %arg5[%c0_6, %c0_7], %8 {strides = array<i32>} : memref<2x484xf32, #tpu.memory_space<vmem>>, vector<2x484xf32>,
    %10 = vector.extract_strided_slice %4 {offsets = [0, 0], sizes = [2, 16], strides = [1, 1]} : vector<2x256xf32> to vector<2x16xf32>
    %c0_8 = arith.constant 0 : index
    %c69 = arith.constant 69 : index
    %11 = vector.load %arg4[%c0_8, %c69] : memref<2x484xf32, #tpu.memory_space<vmem>>, vector<2x16xf32>
    tpu.vector_store %arg4[%c0_8, %c69], %10 {strides = array<i32>} : memref<2x484xf32, #tpu.memory_space<vmem>>, vector<2x16xf32>,
    %12 = vector.extract_strided_slice %5 {offsets = [0, 0], sizes = [2, 16], strides = [1, 1]} : vector<2x256xf32> to vector<2x16xf32>
    %c0_9 = arith.constant 0 : index
    %c69_10 = arith.constant 69 : index
    %13 = vector.load %arg5[%c0_9, %c69_10] : memref<2x484xf32, #tpu.memory_space<vmem>>, vector<2x16xf32>
    tpu.vector_store %arg5[%c0_9, %c69_10], %12 {strides = array<i32>} : memref<2x484xf32, #tpu.memory_space<vmem>>, vector<2x16xf32>,
    %14 = vector.extract_strided_slice %4 {offsets = [0, 16], sizes = [2, 16], strides = [1, 1]} : vector<2x256xf32> to vector<2x16xf32>
    %c0_11 = arith.constant 0 : index
    %c91 = arith.constant 91 : index
    %15 = vector.load %arg4[%c0_11, %c91] : memref<2x484xf32, #tpu.memory_space<vmem>>, vector<2x16xf32>
    tpu.vector_store %arg4[%c0_11, %c91], %14 {strides = array<i32>} : memref<2x484xf32, #tpu.memory_space<vmem>>, vector<2x16xf32>,
    %16 = vector.extract_strided_slice %5 {offsets = [0, 16], sizes = [2, 16], strides = [1, 1]} : vector<2x256xf32> to vector<2x16xf32>
    %c0_12 = arith.constant 0 : index
    %c91_13 = arith.constant 91 : index
    %17 = vector.load %arg5[%c0_12, %c91_13] : memref<2x484xf32, #tpu.memory_space<vmem>>, vector<2x16xf32>
    tpu.vector_store %arg5[%c0_12, %c91_13], %16 {strides = array<i32>} : memref<2x484xf32, #tpu.memory_space<vmem>>, vector<2x16xf32>,
    %18 = vector.extract_strided_slice %4 {offsets = [0, 32], sizes = [2, 16], strides = [1, 1]} : vector<2x256xf32> to vector<2x16xf32>
    %c0_14 = arith.constant 0 : index
    %c113 = arith.constant 113 : index
    %19 = vector.load %arg4[%c0_14, %c113] : memref<2x484xf32, #tpu.memory_space<vmem>>, vector<2x16xf32>
    tpu.vector_store %arg4[%c0_14, %c113], %18 {strides = array<i32>} : memref<2x484xf32, #tpu.memory_space<vmem>>, vector<2x16xf32>,
    %20 = vector.extract_strided_slice %5 {offsets = [0, 32], sizes = [2, 16], strides = [1, 1]} : vector<2x256xf32> to vector<2x16xf32>
    %c0_15 = arith.constant 0 : index
    %c113_16 = arith.constant 113 : index
    %21 = vector.load %arg5[%c0_15, %c113_16] : memref<2x484xf32, #tpu.memory_space<vmem>>, vector<2x16xf32>
    tpu.vector_store %arg5[%c0_15, %c113_16], %20 {strides = array<i32>} : memref<2x484xf32, #tpu.memory_space<vmem>>, vector<2x16xf32>,
    %22 = vector.extract_strided_slice %4 {offsets = [0, 48], sizes = [2, 16], strides = [1, 1]} : vector<2x256xf32> to vector<2x16xf32>
    %c0_17 = arith.constant 0 : index
    %c135 = arith.constant 135 : index
    %23 = vector.load %arg4[%c0_17, %c135] : memref<2x484xf32, #tpu.memory_space<vmem>>, vector<2x16xf32>
    tpu.vector_store %arg4[%c0_17, %c135], %22 {strides = array<i32>} : memref<2x484xf32, #tpu.memory_space<vmem>>, vector<2x16xf32>,
    %24 = vector.extract_strided_slice %5 {offsets = [0, 48], sizes = [2, 16], strides = [1, 1]} : vector<2x256xf32> to vector<2x16xf32>
    %c0_18 = arith.constant 0 : index
    %c135_19 = arith.constant 135 : index
    %25 = vector.load %arg5[%c0_18, %c135_19] : memref<2x484xf32, #tpu.memory_space<vmem>>, vector<2x16xf32>
    tpu.vector_store %arg5[%c0_18, %c135_19], %24 {strides = array<i32>} : memref<2x484xf32, #tpu.memory_space<vmem>>, vector<2x16xf32>,
    %26 = vector.extract_strided_slice %4 {offsets = [0, 64], sizes = [2, 16], strides = [1, 1]} : vector<2x256xf32> to vector<2x16xf32>
    %c0_20 = arith.constant 0 : index
    %c157 = arith.constant 157 : index
    %27 = vector.load %arg4[%c0_20, %c157] : memref<2x484xf32, #tpu.memory_space<vmem>>, vector<2x16xf32>
    tpu.vector_store %arg4[%c0_20, %c157], %26 {strides = array<i32>} : memref<2x484xf32, #tpu.memory_space<vmem>>, vector<2x16xf32>,
    %28 = vector.extract_strided_slice %5 {offsets = [0, 64], sizes = [2, 16], strides = [1, 1]} : vector<2x256xf32> to vector<2x16xf32>
    %c0_21 = arith.constant 0 : index
    %c157_22 = arith.constant 157 : index
    %29 = vector.load %arg5[%c0_21, %c157_22] : memref<2x484xf32, #tpu.memory_space<vmem>>, vector<2x16xf32>
    tpu.vector_store %arg5[%c0_21, %c157_22], %28 {strides = array<i32>} : memref<2x484xf32, #tpu.memory_space<vmem>>, vector<2x16xf32>,
    %30 = vector.extract_strided_slice %4 {offsets = [0, 80], sizes = [2, 16], strides = [1, 1]} : vector<2x256xf32> to vector<2x16xf32>
    %c0_23 = arith.constant 0 : index
    %c179 = arith.constant 179 : index
    %31 = vector.load %arg4[%c0_23, %c179] : memref<2x484xf32, #tpu.memory_space<vmem>>, vector<2x16xf32>
    tpu.vector_store %arg4[%c0_23, %c179], %30 {strides = array<i32>} : memref<2x484xf32, #tpu.memory_space<vmem>>, vector<2x16xf32>,
    %32 = vector.extract_strided_slice %5 {offsets = [0, 80], sizes = [2, 16], strides = [1, 1]} : vector<2x256xf32> to vector<2x16xf32>
    %c0_24 = arith.constant 0 : index
    %c179_25 = arith.constant 179 : index
    %33 = vector.load %arg5[%c0_24, %c179_25] : memref<2x484xf32, #tpu.memory_space<vmem>>, vector<2x16xf32>
    tpu.vector_store %arg5[%c0_24, %c179_25], %32 {strides = array<i32>} : memref<2x484xf32, #tpu.memory_space<vmem>>, vector<2x16xf32>,
    %34 = vector.extract_strided_slice %4 {offsets = [0, 96], sizes = [2, 16], strides = [1, 1]} : vector<2x256xf32> to vector<2x16xf32>
    %c0_26 = arith.constant 0 : index
    %c201 = arith.constant 201 : index
    %35 = vector.load %arg4[%c0_26, %c201] : memref<2x484xf32, #tpu.memory_space<vmem>>, vector<2x16xf32>
    tpu.vector_store %arg4[%c0_26, %c201], %34 {strides = array<i32>} : memref<2x484xf32, #tpu.memory_space<vmem>>, vector<2x16xf32>,
    %36 = vector.extract_strided_slice %5 {offsets = [0, 96], sizes = [2, 16], strides = [1, 1]} : vector<2x256xf32> to vector<2x16xf32>
    %c0_27 = arith.constant 0 : index
    %c201_28 = arith.constant 201 : index
    %37 = vector.load %arg5[%c0_27, %c201_28] : memref<2x484xf32, #tpu.memory_space<vmem>>, vector<2x16xf32>
    tpu.vector_store %arg5[%c0_27, %c201_28], %36 {strides = array<i32>} : memref<2x484xf32, #tpu.memory_space<vmem>>, vector<2x16xf32>,
    %38 = vector.extract_strided_slice %4 {offsets = [0, 112], sizes = [2, 16], strides = [1, 1]} : vector<2x256xf32> to vector<2x16xf32>
    %c0_29 = arith.constant 0 : index
    %c223 = arith.constant 223 : index
    %39 = vector.load %arg4[%c0_29, %c223] : memref<2x484xf32, #tpu.memory_space<vmem>>, vector<2x16xf32>
    tpu.vector_store %arg4[%c0_29, %c223], %38 {strides = array<i32>} : memref<2x484xf32, #tpu.memory_space<vmem>>, vector<2x16xf32>,
    %40 = vector.extract_strided_slice %5 {offsets = [0, 112], sizes = [2, 16], strides = [1, 1]} : vector<2x256xf32> to vector<2x16xf32>
    %c0_30 = arith.constant 0 : index
    %c223_31 = arith.constant 223 : index
    %41 = vector.load %arg5[%c0_30, %c223_31] : memref<2x484xf32, #tpu.memory_space<vmem>>, vector<2x16xf32>
    tpu.vector_store %arg5[%c0_30, %c223_31], %40 {strides = array<i32>} : memref<2x484xf32, #tpu.memory_space<vmem>>, vector<2x16xf32>,
    %42 = vector.extract_strided_slice %4 {offsets = [0, 128], sizes = [2, 16], strides = [1, 1]} : vector<2x256xf32> to vector<2x16xf32>
    %c0_32 = arith.constant 0 : index
    %c245 = arith.constant 245 : index
    %43 = vector.load %arg4[%c0_32, %c245] : memref<2x484xf32, #tpu.memory_space<vmem>>, vector<2x16xf32>
    tpu.vector_store %arg4[%c0_32, %c245], %42 {strides = array<i32>} : memref<2x484xf32, #tpu.memory_space<vmem>>, vector<2x16xf32>,
    %44 = vector.extract_strided_slice %5 {offsets = [0, 128], sizes = [2, 16], strides = [1, 1]} : vector<2x256xf32> to vector<2x16xf32>
    %c0_33 = arith.constant 0 : index
    %c245_34 = arith.constant 245 : index
    %45 = vector.load %arg5[%c0_33, %c245_34] : memref<2x484xf32, #tpu.memory_space<vmem>>, vector<2x16xf32>
    tpu.vector_store %arg5[%c0_33, %c245_34], %44 {strides = array<i32>} : memref<2x484xf32, #tpu.memory_space<vmem>>, vector<2x16xf32>,
    %46 = vector.extract_strided_slice %4 {offsets = [0, 144], sizes = [2, 16], strides = [1, 1]} : vector<2x256xf32> to vector<2x16xf32>
    %c0_35 = arith.constant 0 : index
    %c267 = arith.constant 267 : index
    %47 = vector.load %arg4[%c0_35, %c267] : memref<2x484xf32, #tpu.memory_space<vmem>>, vector<2x16xf32>
    tpu.vector_store %arg4[%c0_35, %c267], %46 {strides = array<i32>} : memref<2x484xf32, #tpu.memory_space<vmem>>, vector<2x16xf32>,
    %48 = vector.extract_strided_slice %5 {offsets = [0, 144], sizes = [2, 16], strides = [1, 1]} : vector<2x256xf32> to vector<2x16xf32>
    %c0_36 = arith.constant 0 : index
    %c267_37 = arith.constant 267 : index
    %49 = vector.load %arg5[%c0_36, %c267_37] : memref<2x484xf32, #tpu.memory_space<vmem>>, vector<2x16xf32>
    tpu.vector_store %arg5[%c0_36, %c267_37], %48 {strides = array<i32>} : memref<2x484xf32, #tpu.memory_space<vmem>>, vector<2x16xf32>,
    %50 = vector.extract_strided_slice %4 {offsets = [0, 160], sizes = [2, 16], strides = [1, 1]} : vector<2x256xf32> to vector<2x16xf32>
    %c0_38 = arith.constant 0 : index
    %c289 = arith.constant 289 : index
    %51 = vector.load %arg4[%c0_38, %c289] : memref<2x484xf32, #tpu.memory_space<vmem>>, vector<2x16xf32>
    tpu.vector_store %arg4[%c0_38, %c289], %50 {strides = array<i32>} : memref<2x484xf32, #tpu.memory_space<vmem>>, vector<2x16xf32>,
    %52 = vector.extract_strided_slice %5 {offsets = [0, 160], sizes = [2, 16], strides = [1, 1]} : vector<2x256xf32> to vector<2x16xf32>
    %c0_39 = arith.constant 0 : index
    %c289_40 = arith.constant 289 : index
    %53 = vector.load %arg5[%c0_39, %c289_40] : memref<2x484xf32, #tpu.memory_space<vmem>>, vector<2x16xf32>
    tpu.vector_store %arg5[%c0_39, %c289_40], %52 {strides = array<i32>} : memref<2x484xf32, #tpu.memory_space<vmem>>, vector<2x16xf32>,
    %54 = vector.extract_strided_slice %4 {offsets = [0, 176], sizes = [2, 16], strides = [1, 1]} : vector<2x256xf32> to vector<2x16xf32>
    %c0_41 = arith.constant 0 : index
    %c311 = arith.constant 311 : index
    %55 = vector.load %arg4[%c0_41, %c311] : memref<2x484xf32, #tpu.memory_space<vmem>>, vector<2x16xf32>
    tpu.vector_store %arg4[%c0_41, %c311], %54 {strides = array<i32>} : memref<2x484xf32, #tpu.memory_space<vmem>>, vector<2x16xf32>,
    %56 = vector.extract_strided_slice %5 {offsets = [0, 176], sizes = [2, 16], strides = [1, 1]} : vector<2x256xf32> to vector<2x16xf32>
    %c0_42 = arith.constant 0 : index
    %c311_43 = arith.constant 311 : index
    %57 = vector.load %arg5[%c0_42, %c311_43] : memref<2x484xf32, #tpu.memory_space<vmem>>, vector<2x16xf32>
    tpu.vector_store %arg5[%c0_42, %c311_43], %56 {strides = array<i32>} : memref<2x484xf32, #tpu.memory_space<vmem>>, vector<2x16xf32>,
    %58 = vector.extract_strided_slice %4 {offsets = [0, 192], sizes = [2, 16], strides = [1, 1]} : vector<2x256xf32> to vector<2x16xf32>
    %c0_44 = arith.constant 0 : index
    %c333 = arith.constant 333 : index
    %59 = vector.load %arg4[%c0_44, %c333] : memref<2x484xf32, #tpu.memory_space<vmem>>, vector<2x16xf32>
    tpu.vector_store %arg4[%c0_44, %c333], %58 {strides = array<i32>} : memref<2x484xf32, #tpu.memory_space<vmem>>, vector<2x16xf32>,
    %60 = vector.extract_strided_slice %5 {offsets = [0, 192], sizes = [2, 16], strides = [1, 1]} : vector<2x256xf32> to vector<2x16xf32>
    %c0_45 = arith.constant 0 : index
    %c333_46 = arith.constant 333 : index
    %61 = vector.load %arg5[%c0_45, %c333_46] : memref<2x484xf32, #tpu.memory_space<vmem>>, vector<2x16xf32>
    tpu.vector_store %arg5[%c0_45, %c333_46], %60 {strides = array<i32>} : memref<2x484xf32, #tpu.memory_space<vmem>>, vector<2x16xf32>,
    %62 = vector.extract_strided_slice %4 {offsets = [0, 208], sizes = [2, 16], strides = [1, 1]} : vector<2x256xf32> to vector<2x16xf32>
    %c0_47 = arith.constant 0 : index
    %c355 = arith.constant 355 : index
    %63 = vector.load %arg4[%c0_47, %c355] : memref<2x484xf32, #tpu.memory_space<vmem>>, vector<2x16xf32>
    tpu.vector_store %arg4[%c0_47, %c355], %62 {strides = array<i32>} : memref<2x484xf32, #tpu.memory_space<vmem>>, vector<2x16xf32>,
    %64 = vector.extract_strided_slice %5 {offsets = [0, 208], sizes = [2, 16], strides = [1, 1]} : vector<2x256xf32> to vector<2x16xf32>
    %c0_48 = arith.constant 0 : index
    %c355_49 = arith.constant 355 : index
    %65 = vector.load %arg5[%c0_48, %c355_49] : memref<2x484xf32, #tpu.memory_space<vmem>>, vector<2x16xf32>
    tpu.vector_store %arg5[%c0_48, %c355_49], %64 {strides = array<i32>} : memref<2x484xf32, #tpu.memory_space<vmem>>, vector<2x16xf32>,
    %66 = vector.extract_strided_slice %4 {offsets = [0, 224], sizes = [2, 16], strides = [1, 1]} : vector<2x256xf32> to vector<2x16xf32>
    %c0_50 = arith.constant 0 : index
    %c377 = arith.constant 377 : index
    %67 = vector.load %arg4[%c0_50, %c377] : memref<2x484xf32, #tpu.memory_space<vmem>>, vector<2x16xf32>
    tpu.vector_store %arg4[%c0_50, %c377], %66 {strides = array<i32>} : memref<2x484xf32, #tpu.memory_space<vmem>>, vector<2x16xf32>,
    %68 = vector.extract_strided_slice %5 {offsets = [0, 224], sizes = [2, 16], strides = [1, 1]} : vector<2x256xf32> to vector<2x16xf32>
    %c0_51 = arith.constant 0 : index
    %c377_52 = arith.constant 377 : index
    %69 = vector.load %arg5[%c0_51, %c377_52] : memref<2x484xf32, #tpu.memory_space<vmem>>, vector<2x16xf32>
    tpu.vector_store %arg5[%c0_51, %c377_52], %68 {strides = array<i32>} : memref<2x484xf32, #tpu.memory_space<vmem>>, vector<2x16xf32>,
    %70 = vector.extract_strided_slice %4 {offsets = [0, 240], sizes = [2, 16], strides = [1, 1]} : vector<2x256xf32> to vector<2x16xf32>
    %c0_53 = arith.constant 0 : index
    %c399 = arith.constant 399 : index
    %71 = vector.load %arg4[%c0_53, %c399] : memref<2x484xf32, #tpu.memory_space<vmem>>, vector<2x16xf32>
    tpu.vector_store %arg4[%c0_53, %c399], %70 {strides = array<i32>} : memref<2x484xf32, #tpu.memory_space<vmem>>, vector<2x16xf32>,
    %72 = vector.extract_strided_slice %5 {offsets = [0, 240], sizes = [2, 16], strides = [1, 1]} : vector<2x256xf32> to vector<2x16xf32>
    %c0_54 = arith.constant 0 : index
    %c399_55 = arith.constant 399 : index
    %73 = vector.load %arg5[%c0_54, %c399_55] : memref<2x484xf32, #tpu.memory_space<vmem>>, vector<2x16xf32>
    tpu.vector_store %arg5[%c0_54, %c399_55], %72 {strides = array<i32>} : memref<2x484xf32, #tpu.memory_space<vmem>>, vector<2x16xf32>,
    %cst_56 = arith.constant 0.000000e+00 : f32
    %74 = vector.broadcast %cst_56 : f32 to vector<2x346xf32>
    %cst_57 = arith.constant 0.000000e+00 : f32
    %75 = vector.broadcast %cst_57 : f32 to vector<2x346xf32>
    %c0_58 = arith.constant 0 : index
    %76 = memref.load %arg1[%c0_58] : memref<98xf32, #tpu.memory_space<smem>>
    %c49 = arith.constant 49 : index
    %77 = memref.load %arg1[%c49] : memref<98xf32, #tpu.memory_space<smem>>
    %c0_59 = arith.constant 0 : index
    %c0_60 = arith.constant 0 : index
    %78 = vector.load %arg4[%c0_59, %c0_60] : memref<2x484xf32, #tpu.memory_space<vmem>>, vector<2x346xf32>
    %79 = vector.broadcast %76 : f32 to vector<2x346xf32>
    %80 = arith.mulf %79, %78 : vector<2x346xf32>
    %81 = arith.addf %74, %80 : vector<2x346xf32>
    %c0_61 = arith.constant 0 : index
    %c0_62 = arith.constant 0 : index
    %82 = vector.load %arg5[%c0_61, %c0_62] : memref<2x484xf32, #tpu.memory_space<vmem>>, vector<2x346xf32>
    %83 = vector.broadcast %77 : f32 to vector<2x346xf32>
    %84 = arith.mulf %83, %82 : vector<2x346xf32>
    %85 = arith.addf %75, %84 : vector<2x346xf32>
    %c1 = arith.constant 1 : index
    %86 = memref.load %arg1[%c1] : memref<98xf32, #tpu.memory_space<smem>>
    %c50 = arith.constant 50 : index
    %87 = memref.load %arg1[%c50] : memref<98xf32, #tpu.memory_space<smem>>
    %c0_63 = arith.constant 0 : index
    %c1_64 = arith.constant 1 : index
    %88 = vector.load %arg4[%c0_63, %c1_64] : memref<2x484xf32, #tpu.memory_space<vmem>>, vector<2x346xf32>
    %89 = vector.broadcast %86 : f32 to vector<2x346xf32>
    %90 = arith.mulf %89, %88 : vector<2x346xf32>
    %91 = arith.addf %81, %90 : vector<2x346xf32>
    %c0_65 = arith.constant 0 : index
    %c1_66 = arith.constant 1 : index
    %92 = vector.load %arg5[%c0_65, %c1_66] : memref<2x484xf32, #tpu.memory_space<vmem>>, vector<2x346xf32>
    %93 = vector.broadcast %87 : f32 to vector<2x346xf32>
    %94 = arith.mulf %93, %92 : vector<2x346xf32>
    %95 = arith.addf %85, %94 : vector<2x346xf32>
    %c2 = arith.constant 2 : index
    %96 = memref.load %arg1[%c2] : memref<98xf32, #tpu.memory_space<smem>>
    %c51 = arith.constant 51 : index
    %97 = memref.load %arg1[%c51] : memref<98xf32, #tpu.memory_space<smem>>
    %c0_67 = arith.constant 0 : index
    %c2_68 = arith.constant 2 : index
    %98 = vector.load %arg4[%c0_67, %c2_68] : memref<2x484xf32, #tpu.memory_space<vmem>>, vector<2x346xf32>
    %99 = vector.broadcast %96 : f32 to vector<2x346xf32>
    %100 = arith.mulf %99, %98 : vector<2x346xf32>
    %101 = arith.addf %91, %100 : vector<2x346xf32>
    %c0_69 = arith.constant 0 : index
    %c2_70 = arith.constant 2 : index
    %102 = vector.load %arg5[%c0_69, %c2_70] : memref<2x484xf32, #tpu.memory_space<vmem>>, vector<2x346xf32>
    %103 = vector.broadcast %97 : f32 to vector<2x346xf32>
    %104 = arith.mulf %103, %102 : vector<2x346xf32>
    %105 = arith.addf %95, %104 : vector<2x346xf32>
    %c3 = arith.constant 3 : index
    %106 = memref.load %arg1[%c3] : memref<98xf32, #tpu.memory_space<smem>>
    %c52 = arith.constant 52 : index
    %107 = memref.load %arg1[%c52] : memref<98xf32, #tpu.memory_space<smem>>
    %c0_71 = arith.constant 0 : index
    %c3_72 = arith.constant 3 : index
    %108 = vector.load %arg4[%c0_71, %c3_72] : memref<2x484xf32, #tpu.memory_space<vmem>>, vector<2x346xf32>
    %109 = vector.broadcast %106 : f32 to vector<2x346xf32>
    %110 = arith.mulf %109, %108 : vector<2x346xf32>
    %111 = arith.addf %101, %110 : vector<2x346xf32>
    %c0_73 = arith.constant 0 : index
    %c3_74 = arith.constant 3 : index
    %112 = vector.load %arg5[%c0_73, %c3_74] : memref<2x484xf32, #tpu.memory_space<vmem>>, vector<2x346xf32>
    %113 = vector.broadcast %107 : f32 to vector<2x346xf32>
    %114 = arith.mulf %113, %112 : vector<2x346xf32>
    %115 = arith.addf %105, %114 : vector<2x346xf32>
    %c4 = arith.constant 4 : index
    %116 = memref.load %arg1[%c4] : memref<98xf32, #tpu.memory_space<smem>>
    %c53 = arith.constant 53 : index
    %117 = memref.load %arg1[%c53] : memref<98xf32, #tpu.memory_space<smem>>
    %c0_75 = arith.constant 0 : index
    %c4_76 = arith.constant 4 : index
    %118 = vector.load %arg4[%c0_75, %c4_76] : memref<2x484xf32, #tpu.memory_space<vmem>>, vector<2x346xf32>
    %119 = vector.broadcast %116 : f32 to vector<2x346xf32>
    %120 = arith.mulf %119, %118 : vector<2x346xf32>
    %121 = arith.addf %111, %120 : vector<2x346xf32>
    %c0_77 = arith.constant 0 : index
    %c4_78 = arith.constant 4 : index
    %122 = vector.load %arg5[%c0_77, %c4_78] : memref<2x484xf32, #tpu.memory_space<vmem>>, vector<2x346xf32>
    %123 = vector.broadcast %117 : f32 to vector<2x346xf32>
    %124 = arith.mulf %123, %122 : vector<2x346xf32>
    %125 = arith.addf %115, %124 : vector<2x346xf32>
    %c5 = arith.constant 5 : index
    %126 = memref.load %arg1[%c5] : memref<98xf32, #tpu.memory_space<smem>>
    %c54 = arith.constant 54 : index
    %127 = memref.load %arg1[%c54] : memref<98xf32, #tpu.memory_space<smem>>
    %c0_79 = arith.constant 0 : index
    %c5_80 = arith.constant 5 : index
    %128 = vector.load %arg4[%c0_79, %c5_80] : memref<2x484xf32, #tpu.memory_space<vmem>>, vector<2x346xf32>
    %129 = vector.broadcast %126 : f32 to vector<2x346xf32>
    %130 = arith.mulf %129, %128 : vector<2x346xf32>
    %131 = arith.addf %121, %130 : vector<2x346xf32>
    %c0_81 = arith.constant 0 : index
    %c5_82 = arith.constant 5 : index
    %132 = vector.load %arg5[%c0_81, %c5_82] : memref<2x484xf32, #tpu.memory_space<vmem>>, vector<2x346xf32>
    %133 = vector.broadcast %127 : f32 to vector<2x346xf32>
    %134 = arith.mulf %133, %132 : vector<2x346xf32>
    %135 = arith.addf %125, %134 : vector<2x346xf32>
    %c6 = arith.constant 6 : index
    %136 = memref.load %arg1[%c6] : memref<98xf32, #tpu.memory_space<smem>>
    %c55 = arith.constant 55 : index
    %137 = memref.load %arg1[%c55] : memref<98xf32, #tpu.memory_space<smem>>
    %c0_83 = arith.constant 0 : index
    %c6_84 = arith.constant 6 : index
    %138 = vector.load %arg4[%c0_83, %c6_84] : memref<2x484xf32, #tpu.memory_space<vmem>>, vector<2x346xf32>
    %139 = vector.broadcast %136 : f32 to vector<2x346xf32>
    %140 = arith.mulf %139, %138 : vector<2x346xf32>
    %141 = arith.addf %131, %140 : vector<2x346xf32>
    %c0_85 = arith.constant 0 : index
    %c6_86 = arith.constant 6 : index
    %142 = vector.load %arg5[%c0_85, %c6_86] : memref<2x484xf32, #tpu.memory_space<vmem>>, vector<2x346xf32>
    %143 = vector.broadcast %137 : f32 to vector<2x346xf32>
    %144 = arith.mulf %143, %142 : vector<2x346xf32>
    %145 = arith.addf %135, %144 : vector<2x346xf32>
    %c7 = arith.constant 7 : index
    %146 = memref.load %arg1[%c7] : memref<98xf32, #tpu.memory_space<smem>>
    %c56 = arith.constant 56 : index
    %147 = memref.load %arg1[%c56] : memref<98xf32, #tpu.memory_space<smem>>
    %c0_87 = arith.constant 0 : index
    %c22 = arith.constant 22 : index
    %148 = vector.load %arg4[%c0_87, %c22] : memref<2x484xf32, #tpu.memory_space<vmem>>, vector<2x346xf32>
    %149 = vector.broadcast %146 : f32 to vector<2x346xf32>
    %150 = arith.mulf %149, %148 : vector<2x346xf32>
    %151 = arith.addf %141, %150 : vector<2x346xf32>
    %c0_88 = arith.constant 0 : index
    %c22_89 = arith.constant 22 : index
    %152 = vector.load %arg5[%c0_88, %c22_89] : memref<2x484xf32, #tpu.memory_space<vmem>>, vector<2x346xf32>
    %153 = vector.broadcast %147 : f32 to vector<2x346xf32>
    %154 = arith.mulf %153, %152 : vector<2x346xf32>
    %155 = arith.addf %145, %154 : vector<2x346xf32>
    %c8 = arith.constant 8 : index
    %156 = memref.load %arg1[%c8] : memref<98xf32, #tpu.memory_space<smem>>
    %c57 = arith.constant 57 : index
    %157 = memref.load %arg1[%c57] : memref<98xf32, #tpu.memory_space<smem>>
    %c0_90 = arith.constant 0 : index
    %c23 = arith.constant 23 : index
    %158 = vector.load %arg4[%c0_90, %c23] : memref<2x484xf32, #tpu.memory_space<vmem>>, vector<2x346xf32>
    %159 = vector.broadcast %156 : f32 to vector<2x346xf32>
    %160 = arith.mulf %159, %158 : vector<2x346xf32>
    %161 = arith.addf %151, %160 : vector<2x346xf32>
    %c0_91 = arith.constant 0 : index
    %c23_92 = arith.constant 23 : index
    %162 = vector.load %arg5[%c0_91, %c23_92] : memref<2x484xf32, #tpu.memory_space<vmem>>, vector<2x346xf32>
    %163 = vector.broadcast %157 : f32 to vector<2x346xf32>
    %164 = arith.mulf %163, %162 : vector<2x346xf32>
    %165 = arith.addf %155, %164 : vector<2x346xf32>
    %c9 = arith.constant 9 : index
    %166 = memref.load %arg1[%c9] : memref<98xf32, #tpu.memory_space<smem>>
    %c58 = arith.constant 58 : index
    %167 = memref.load %arg1[%c58] : memref<98xf32, #tpu.memory_space<smem>>
    %c0_93 = arith.constant 0 : index
    %c24 = arith.constant 24 : index
    %168 = vector.load %arg4[%c0_93, %c24] : memref<2x484xf32, #tpu.memory_space<vmem>>, vector<2x346xf32>
    %169 = vector.broadcast %166 : f32 to vector<2x346xf32>
    %170 = arith.mulf %169, %168 : vector<2x346xf32>
    %171 = arith.addf %161, %170 : vector<2x346xf32>
    %c0_94 = arith.constant 0 : index
    %c24_95 = arith.constant 24 : index
    %172 = vector.load %arg5[%c0_94, %c24_95] : memref<2x484xf32, #tpu.memory_space<vmem>>, vector<2x346xf32>
    %173 = vector.broadcast %167 : f32 to vector<2x346xf32>
    %174 = arith.mulf %173, %172 : vector<2x346xf32>
    %175 = arith.addf %165, %174 : vector<2x346xf32>
    %c10 = arith.constant 10 : index
    %176 = memref.load %arg1[%c10] : memref<98xf32, #tpu.memory_space<smem>>
    %c59 = arith.constant 59 : index
    %177 = memref.load %arg1[%c59] : memref<98xf32, #tpu.memory_space<smem>>
    %c0_96 = arith.constant 0 : index
    %c25 = arith.constant 25 : index
    %178 = vector.load %arg4[%c0_96, %c25] : memref<2x484xf32, #tpu.memory_space<vmem>>, vector<2x346xf32>
    %179 = vector.broadcast %176 : f32 to vector<2x346xf32>
    %180 = arith.mulf %179, %178 : vector<2x346xf32>
    %181 = arith.addf %171, %180 : vector<2x346xf32>
    %c0_97 = arith.constant 0 : index
    %c25_98 = arith.constant 25 : index
    %182 = vector.load %arg5[%c0_97, %c25_98] : memref<2x484xf32, #tpu.memory_space<vmem>>, vector<2x346xf32>
    %183 = vector.broadcast %177 : f32 to vector<2x346xf32>
    %184 = arith.mulf %183, %182 : vector<2x346xf32>
    %185 = arith.addf %175, %184 : vector<2x346xf32>
    %c11 = arith.constant 11 : index
    %186 = memref.load %arg1[%c11] : memref<98xf32, #tpu.memory_space<smem>>
    %c60 = arith.constant 60 : index
    %187 = memref.load %arg1[%c60] : memref<98xf32, #tpu.memory_space<smem>>
    %c0_99 = arith.constant 0 : index
    %c26 = arith.constant 26 : index
    %188 = vector.load %arg4[%c0_99, %c26] : memref<2x484xf32, #tpu.memory_space<vmem>>, vector<2x346xf32>
    %189 = vector.broadcast %186 : f32 to vector<2x346xf32>
    %190 = arith.mulf %189, %188 : vector<2x346xf32>
    %191 = arith.addf %181, %190 : vector<2x346xf32>
    %c0_100 = arith.constant 0 : index
    %c26_101 = arith.constant 26 : index
    %192 = vector.load %arg5[%c0_100, %c26_101] : memref<2x484xf32, #tpu.memory_space<vmem>>, vector<2x346xf32>
    %193 = vector.broadcast %187 : f32 to vector<2x346xf32>
    %194 = arith.mulf %193, %192 : vector<2x346xf32>
    %195 = arith.addf %185, %194 : vector<2x346xf32>
    %c12 = arith.constant 12 : index
    %196 = memref.load %arg1[%c12] : memref<98xf32, #tpu.memory_space<smem>>
    %c61 = arith.constant 61 : index
    %197 = memref.load %arg1[%c61] : memref<98xf32, #tpu.memory_space<smem>>
    %c0_102 = arith.constant 0 : index
    %c27 = arith.constant 27 : index
    %198 = vector.load %arg4[%c0_102, %c27] : memref<2x484xf32, #tpu.memory_space<vmem>>, vector<2x346xf32>
    %199 = vector.broadcast %196 : f32 to vector<2x346xf32>
    %200 = arith.mulf %199, %198 : vector<2x346xf32>
    %201 = arith.addf %191, %200 : vector<2x346xf32>
    %c0_103 = arith.constant 0 : index
    %c27_104 = arith.constant 27 : index
    %202 = vector.load %arg5[%c0_103, %c27_104] : memref<2x484xf32, #tpu.memory_space<vmem>>, vector<2x346xf32>
    %203 = vector.broadcast %197 : f32 to vector<2x346xf32>
    %204 = arith.mulf %203, %202 : vector<2x346xf32>
    %205 = arith.addf %195, %204 : vector<2x346xf32>
    %c13 = arith.constant 13 : index
    %206 = memref.load %arg1[%c13] : memref<98xf32, #tpu.memory_space<smem>>
    %c62 = arith.constant 62 : index
    %207 = memref.load %arg1[%c62] : memref<98xf32, #tpu.memory_space<smem>>
    %c0_105 = arith.constant 0 : index
    %c28 = arith.constant 28 : index
    %208 = vector.load %arg4[%c0_105, %c28] : memref<2x484xf32, #tpu.memory_space<vmem>>, vector<2x346xf32>
    %209 = vector.broadcast %206 : f32 to vector<2x346xf32>
    %210 = arith.mulf %209, %208 : vector<2x346xf32>
    %211 = arith.addf %201, %210 : vector<2x346xf32>
    %c0_106 = arith.constant 0 : index
    %c28_107 = arith.constant 28 : index
    %212 = vector.load %arg5[%c0_106, %c28_107] : memref<2x484xf32, #tpu.memory_space<vmem>>, vector<2x346xf32>
    %213 = vector.broadcast %207 : f32 to vector<2x346xf32>
    %214 = arith.mulf %213, %212 : vector<2x346xf32>
    %215 = arith.addf %205, %214 : vector<2x346xf32>
    %c14 = arith.constant 14 : index
    %216 = memref.load %arg1[%c14] : memref<98xf32, #tpu.memory_space<smem>>
    %c63 = arith.constant 63 : index
    %217 = memref.load %arg1[%c63] : memref<98xf32, #tpu.memory_space<smem>>
    %c0_108 = arith.constant 0 : index
    %c44 = arith.constant 44 : index
    %218 = vector.load %arg4[%c0_108, %c44] : memref<2x484xf32, #tpu.memory_space<vmem>>, vector<2x346xf32>
    %219 = vector.broadcast %216 : f32 to vector<2x346xf32>
    %220 = arith.mulf %219, %218 : vector<2x346xf32>
    %221 = arith.addf %211, %220 : vector<2x346xf32>
    %c0_109 = arith.constant 0 : index
    %c44_110 = arith.constant 44 : index
    %222 = vector.load %arg5[%c0_109, %c44_110] : memref<2x484xf32, #tpu.memory_space<vmem>>, vector<2x346xf32>
    %223 = vector.broadcast %217 : f32 to vector<2x346xf32>
    %224 = arith.mulf %223, %222 : vector<2x346xf32>
    %225 = arith.addf %215, %224 : vector<2x346xf32>
    %c15 = arith.constant 15 : index
    %226 = memref.load %arg1[%c15] : memref<98xf32, #tpu.memory_space<smem>>
    %c64 = arith.constant 64 : index
    %227 = memref.load %arg1[%c64] : memref<98xf32, #tpu.memory_space<smem>>
    %c0_111 = arith.constant 0 : index
    %c45 = arith.constant 45 : index
    %228 = vector.load %arg4[%c0_111, %c45] : memref<2x484xf32, #tpu.memory_space<vmem>>, vector<2x346xf32>
    %229 = vector.broadcast %226 : f32 to vector<2x346xf32>
    %230 = arith.mulf %229, %228 : vector<2x346xf32>
    %231 = arith.addf %221, %230 : vector<2x346xf32>
    %c0_112 = arith.constant 0 : index
    %c45_113 = arith.constant 45 : index
    %232 = vector.load %arg5[%c0_112, %c45_113] : memref<2x484xf32, #tpu.memory_space<vmem>>, vector<2x346xf32>
    %233 = vector.broadcast %227 : f32 to vector<2x346xf32>
    %234 = arith.mulf %233, %232 : vector<2x346xf32>
    %235 = arith.addf %225, %234 : vector<2x346xf32>
    %c16 = arith.constant 16 : index
    %236 = memref.load %arg1[%c16] : memref<98xf32, #tpu.memory_space<smem>>
    %c65 = arith.constant 65 : index
    %237 = memref.load %arg1[%c65] : memref<98xf32, #tpu.memory_space<smem>>
    %c0_114 = arith.constant 0 : index
    %c46 = arith.constant 46 : index
    %238 = vector.load %arg4[%c0_114, %c46] : memref<2x484xf32, #tpu.memory_space<vmem>>, vector<2x346xf32>
    %239 = vector.broadcast %236 : f32 to vector<2x346xf32>
    %240 = arith.mulf %239, %238 : vector<2x346xf32>
    %241 = arith.addf %231, %240 : vector<2x346xf32>
    %c0_115 = arith.constant 0 : index
    %c46_116 = arith.constant 46 : index
    %242 = vector.load %arg5[%c0_115, %c46_116] : memref<2x484xf32, #tpu.memory_space<vmem>>, vector<2x346xf32>
    %243 = vector.broadcast %237 : f32 to vector<2x346xf32>
    %244 = arith.mulf %243, %242 : vector<2x346xf32>
    %245 = arith.addf %235, %244 : vector<2x346xf32>
    %c17 = arith.constant 17 : index
    %246 = memref.load %arg1[%c17] : memref<98xf32, #tpu.memory_space<smem>>
    %c66 = arith.constant 66 : index
    %247 = memref.load %arg1[%c66] : memref<98xf32, #tpu.memory_space<smem>>
    %c0_117 = arith.constant 0 : index
    %c47 = arith.constant 47 : index
    %248 = vector.load %arg4[%c0_117, %c47] : memref<2x484xf32, #tpu.memory_space<vmem>>, vector<2x346xf32>
    %249 = vector.broadcast %246 : f32 to vector<2x346xf32>
    %250 = arith.mulf %249, %248 : vector<2x346xf32>
    %251 = arith.addf %241, %250 : vector<2x346xf32>
    %c0_118 = arith.constant 0 : index
    %c47_119 = arith.constant 47 : index
    %252 = vector.load %arg5[%c0_118, %c47_119] : memref<2x484xf32, #tpu.memory_space<vmem>>, vector<2x346xf32>
    %253 = vector.broadcast %247 : f32 to vector<2x346xf32>
    %254 = arith.mulf %253, %252 : vector<2x346xf32>
    %255 = arith.addf %245, %254 : vector<2x346xf32>
    %c18 = arith.constant 18 : index
    %256 = memref.load %arg1[%c18] : memref<98xf32, #tpu.memory_space<smem>>
    %c67 = arith.constant 67 : index
    %257 = memref.load %arg1[%c67] : memref<98xf32, #tpu.memory_space<smem>>
    %c0_120 = arith.constant 0 : index
    %c48 = arith.constant 48 : index
    %258 = vector.load %arg4[%c0_120, %c48] : memref<2x484xf32, #tpu.memory_space<vmem>>, vector<2x346xf32>
    %259 = vector.broadcast %256 : f32 to vector<2x346xf32>
    %260 = arith.mulf %259, %258 : vector<2x346xf32>
    %261 = arith.addf %251, %260 : vector<2x346xf32>
    %c0_121 = arith.constant 0 : index
    %c48_122 = arith.constant 48 : index
    %262 = vector.load %arg5[%c0_121, %c48_122] : memref<2x484xf32, #tpu.memory_space<vmem>>, vector<2x346xf32>
    %263 = vector.broadcast %257 : f32 to vector<2x346xf32>
    %264 = arith.mulf %263, %262 : vector<2x346xf32>
    %265 = arith.addf %255, %264 : vector<2x346xf32>
    %c19 = arith.constant 19 : index
    %266 = memref.load %arg1[%c19] : memref<98xf32, #tpu.memory_space<smem>>
    %c68 = arith.constant 68 : index
    %267 = memref.load %arg1[%c68] : memref<98xf32, #tpu.memory_space<smem>>
    %c0_123 = arith.constant 0 : index
    %c49_124 = arith.constant 49 : index
    %268 = vector.load %arg4[%c0_123, %c49_124] : memref<2x484xf32, #tpu.memory_space<vmem>>, vector<2x346xf32>
    %269 = vector.broadcast %266 : f32 to vector<2x346xf32>
    %270 = arith.mulf %269, %268 : vector<2x346xf32>
    %271 = arith.addf %261, %270 : vector<2x346xf32>
    %c0_125 = arith.constant 0 : index
    %c49_126 = arith.constant 49 : index
    %272 = vector.load %arg5[%c0_125, %c49_126] : memref<2x484xf32, #tpu.memory_space<vmem>>, vector<2x346xf32>
    %273 = vector.broadcast %267 : f32 to vector<2x346xf32>
    %274 = arith.mulf %273, %272 : vector<2x346xf32>
    %275 = arith.addf %265, %274 : vector<2x346xf32>
    %c20 = arith.constant 20 : index
    %276 = memref.load %arg1[%c20] : memref<98xf32, #tpu.memory_space<smem>>
    %c69_127 = arith.constant 69 : index
    %277 = memref.load %arg1[%c69_127] : memref<98xf32, #tpu.memory_space<smem>>
    %c0_128 = arith.constant 0 : index
    %c50_129 = arith.constant 50 : index
    %278 = vector.load %arg4[%c0_128, %c50_129] : memref<2x484xf32, #tpu.memory_space<vmem>>, vector<2x346xf32>
    %279 = vector.broadcast %276 : f32 to vector<2x346xf32>
    %280 = arith.mulf %279, %278 : vector<2x346xf32>
    %281 = arith.addf %271, %280 : vector<2x346xf32>
    %c0_130 = arith.constant 0 : index
    %c50_131 = arith.constant 50 : index
    %282 = vector.load %arg5[%c0_130, %c50_131] : memref<2x484xf32, #tpu.memory_space<vmem>>, vector<2x346xf32>
    %283 = vector.broadcast %277 : f32 to vector<2x346xf32>
    %284 = arith.mulf %283, %282 : vector<2x346xf32>
    %285 = arith.addf %275, %284 : vector<2x346xf32>
    %c21 = arith.constant 21 : index
    %286 = memref.load %arg1[%c21] : memref<98xf32, #tpu.memory_space<smem>>
    %c70 = arith.constant 70 : index
    %287 = memref.load %arg1[%c70] : memref<98xf32, #tpu.memory_space<smem>>
    %c0_132 = arith.constant 0 : index
    %c66_133 = arith.constant 66 : index
    %288 = vector.load %arg4[%c0_132, %c66_133] : memref<2x484xf32, #tpu.memory_space<vmem>>, vector<2x346xf32>
    %289 = vector.broadcast %286 : f32 to vector<2x346xf32>
    %290 = arith.mulf %289, %288 : vector<2x346xf32>
    %291 = arith.addf %281, %290 : vector<2x346xf32>
    %c0_134 = arith.constant 0 : index
    %c66_135 = arith.constant 66 : index
    %292 = vector.load %arg5[%c0_134, %c66_135] : memref<2x484xf32, #tpu.memory_space<vmem>>, vector<2x346xf32>
    %293 = vector.broadcast %287 : f32 to vector<2x346xf32>
    %294 = arith.mulf %293, %292 : vector<2x346xf32>
    %295 = arith.addf %285, %294 : vector<2x346xf32>
    %c22_136 = arith.constant 22 : index
    %296 = memref.load %arg1[%c22_136] : memref<98xf32, #tpu.memory_space<smem>>
    %c71 = arith.constant 71 : index
    %297 = memref.load %arg1[%c71] : memref<98xf32, #tpu.memory_space<smem>>
    %c0_137 = arith.constant 0 : index
    %c67_138 = arith.constant 67 : index
    %298 = vector.load %arg4[%c0_137, %c67_138] : memref<2x484xf32, #tpu.memory_space<vmem>>, vector<2x346xf32>
    %299 = vector.broadcast %296 : f32 to vector<2x346xf32>
    %300 = arith.mulf %299, %298 : vector<2x346xf32>
    %301 = arith.addf %291, %300 : vector<2x346xf32>
    %c0_139 = arith.constant 0 : index
    %c67_140 = arith.constant 67 : index
    %302 = vector.load %arg5[%c0_139, %c67_140] : memref<2x484xf32, #tpu.memory_space<vmem>>, vector<2x346xf32>
    %303 = vector.broadcast %297 : f32 to vector<2x346xf32>
    %304 = arith.mulf %303, %302 : vector<2x346xf32>
    %305 = arith.addf %295, %304 : vector<2x346xf32>
    %c23_141 = arith.constant 23 : index
    %306 = memref.load %arg1[%c23_141] : memref<98xf32, #tpu.memory_space<smem>>
    %c72 = arith.constant 72 : index
    %307 = memref.load %arg1[%c72] : memref<98xf32, #tpu.memory_space<smem>>
    %c0_142 = arith.constant 0 : index
    %c68_143 = arith.constant 68 : index
    %308 = vector.load %arg4[%c0_142, %c68_143] : memref<2x484xf32, #tpu.memory_space<vmem>>, vector<2x346xf32>
    %309 = vector.broadcast %306 : f32 to vector<2x346xf32>
    %310 = arith.mulf %309, %308 : vector<2x346xf32>
    %311 = arith.addf %301, %310 : vector<2x346xf32>
    %c0_144 = arith.constant 0 : index
    %c68_145 = arith.constant 68 : index
    %312 = vector.load %arg5[%c0_144, %c68_145] : memref<2x484xf32, #tpu.memory_space<vmem>>, vector<2x346xf32>
    %313 = vector.broadcast %307 : f32 to vector<2x346xf32>
    %314 = arith.mulf %313, %312 : vector<2x346xf32>
    %315 = arith.addf %305, %314 : vector<2x346xf32>
    %c24_146 = arith.constant 24 : index
    %316 = memref.load %arg1[%c24_146] : memref<98xf32, #tpu.memory_space<smem>>
    %c73 = arith.constant 73 : index
    %317 = memref.load %arg1[%c73] : memref<98xf32, #tpu.memory_space<smem>>
    %c0_147 = arith.constant 0 : index
    %c69_148 = arith.constant 69 : index
    %318 = vector.load %arg4[%c0_147, %c69_148] : memref<2x484xf32, #tpu.memory_space<vmem>>, vector<2x346xf32>
    %319 = vector.broadcast %316 : f32 to vector<2x346xf32>
    %320 = arith.mulf %319, %318 : vector<2x346xf32>
    %321 = arith.addf %311, %320 : vector<2x346xf32>
    %c0_149 = arith.constant 0 : index
    %c69_150 = arith.constant 69 : index
    %322 = vector.load %arg5[%c0_149, %c69_150] : memref<2x484xf32, #tpu.memory_space<vmem>>, vector<2x346xf32>
    %323 = vector.broadcast %317 : f32 to vector<2x346xf32>
    %324 = arith.mulf %323, %322 : vector<2x346xf32>
    %325 = arith.addf %315, %324 : vector<2x346xf32>
    %c25_151 = arith.constant 25 : index
    %326 = memref.load %arg1[%c25_151] : memref<98xf32, #tpu.memory_space<smem>>
    %c74 = arith.constant 74 : index
    %327 = memref.load %arg1[%c74] : memref<98xf32, #tpu.memory_space<smem>>
    %c0_152 = arith.constant 0 : index
    %c70_153 = arith.constant 70 : index
    %328 = vector.load %arg4[%c0_152, %c70_153] : memref<2x484xf32, #tpu.memory_space<vmem>>, vector<2x346xf32>
    %329 = vector.broadcast %326 : f32 to vector<2x346xf32>
    %330 = arith.mulf %329, %328 : vector<2x346xf32>
    %331 = arith.addf %321, %330 : vector<2x346xf32>
    %c0_154 = arith.constant 0 : index
    %c70_155 = arith.constant 70 : index
    %332 = vector.load %arg5[%c0_154, %c70_155] : memref<2x484xf32, #tpu.memory_space<vmem>>, vector<2x346xf32>
    %333 = vector.broadcast %327 : f32 to vector<2x346xf32>
    %334 = arith.mulf %333, %332 : vector<2x346xf32>
    %335 = arith.addf %325, %334 : vector<2x346xf32>
    %c26_156 = arith.constant 26 : index
    %336 = memref.load %arg1[%c26_156] : memref<98xf32, #tpu.memory_space<smem>>
    %c75 = arith.constant 75 : index
    %337 = memref.load %arg1[%c75] : memref<98xf32, #tpu.memory_space<smem>>
    %c0_157 = arith.constant 0 : index
    %c71_158 = arith.constant 71 : index
    %338 = vector.load %arg4[%c0_157, %c71_158] : memref<2x484xf32, #tpu.memory_space<vmem>>, vector<2x346xf32>
    %339 = vector.broadcast %336 : f32 to vector<2x346xf32>
    %340 = arith.mulf %339, %338 : vector<2x346xf32>
    %341 = arith.addf %331, %340 : vector<2x346xf32>
    %c0_159 = arith.constant 0 : index
    %c71_160 = arith.constant 71 : index
    %342 = vector.load %arg5[%c0_159, %c71_160] : memref<2x484xf32, #tpu.memory_space<vmem>>, vector<2x346xf32>
    %343 = vector.broadcast %337 : f32 to vector<2x346xf32>
    %344 = arith.mulf %343, %342 : vector<2x346xf32>
    %345 = arith.addf %335, %344 : vector<2x346xf32>
    %c27_161 = arith.constant 27 : index
    %346 = memref.load %arg1[%c27_161] : memref<98xf32, #tpu.memory_space<smem>>
    %c76 = arith.constant 76 : index
    %347 = memref.load %arg1[%c76] : memref<98xf32, #tpu.memory_space<smem>>
    %c0_162 = arith.constant 0 : index
    %c72_163 = arith.constant 72 : index
    %348 = vector.load %arg4[%c0_162, %c72_163] : memref<2x484xf32, #tpu.memory_space<vmem>>, vector<2x346xf32>
    %349 = vector.broadcast %346 : f32 to vector<2x346xf32>
    %350 = arith.mulf %349, %348 : vector<2x346xf32>
    %351 = arith.addf %341, %350 : vector<2x346xf32>
    %c0_164 = arith.constant 0 : index
    %c72_165 = arith.constant 72 : index
    %352 = vector.load %arg5[%c0_164, %c72_165] : memref<2x484xf32, #tpu.memory_space<vmem>>, vector<2x346xf32>
    %353 = vector.broadcast %347 : f32 to vector<2x346xf32>
    %354 = arith.mulf %353, %352 : vector<2x346xf32>
    %355 = arith.addf %345, %354 : vector<2x346xf32>
    %c28_166 = arith.constant 28 : index
    %356 = memref.load %arg1[%c28_166] : memref<98xf32, #tpu.memory_space<smem>>
    %c77 = arith.constant 77 : index
    %357 = memref.load %arg1[%c77] : memref<98xf32, #tpu.memory_space<smem>>
    %c0_167 = arith.constant 0 : index
    %c88 = arith.constant 88 : index
    %358 = vector.load %arg4[%c0_167, %c88] : memref<2x484xf32, #tpu.memory_space<vmem>>, vector<2x346xf32>
    %359 = vector.broadcast %356 : f32 to vector<2x346xf32>
    %360 = arith.mulf %359, %358 : vector<2x346xf32>
    %361 = arith.addf %351, %360 : vector<2x346xf32>
    %c0_168 = arith.constant 0 : index
    %c88_169 = arith.constant 88 : index
    %362 = vector.load %arg5[%c0_168, %c88_169] : memref<2x484xf32, #tpu.memory_space<vmem>>, vector<2x346xf32>
    %363 = vector.broadcast %357 : f32 to vector<2x346xf32>
    %364 = arith.mulf %363, %362 : vector<2x346xf32>
    %365 = arith.addf %355, %364 : vector<2x346xf32>
    %c29 = arith.constant 29 : index
    %366 = memref.load %arg1[%c29] : memref<98xf32, #tpu.memory_space<smem>>
    %c78 = arith.constant 78 : index
    %367 = memref.load %arg1[%c78] : memref<98xf32, #tpu.memory_space<smem>>
    %c0_170 = arith.constant 0 : index
    %c89 = arith.constant 89 : index
    %368 = vector.load %arg4[%c0_170, %c89] : memref<2x484xf32, #tpu.memory_space<vmem>>, vector<2x346xf32>
    %369 = vector.broadcast %366 : f32 to vector<2x346xf32>
    %370 = arith.mulf %369, %368 : vector<2x346xf32>
    %371 = arith.addf %361, %370 : vector<2x346xf32>
    %c0_171 = arith.constant 0 : index
    %c89_172 = arith.constant 89 : index
    %372 = vector.load %arg5[%c0_171, %c89_172] : memref<2x484xf32, #tpu.memory_space<vmem>>, vector<2x346xf32>
    %373 = vector.broadcast %367 : f32 to vector<2x346xf32>
    %374 = arith.mulf %373, %372 : vector<2x346xf32>
    %375 = arith.addf %365, %374 : vector<2x346xf32>
    %c30 = arith.constant 30 : index
    %376 = memref.load %arg1[%c30] : memref<98xf32, #tpu.memory_space<smem>>
    %c79 = arith.constant 79 : index
    %377 = memref.load %arg1[%c79] : memref<98xf32, #tpu.memory_space<smem>>
    %c0_173 = arith.constant 0 : index
    %c90 = arith.constant 90 : index
    %378 = vector.load %arg4[%c0_173, %c90] : memref<2x484xf32, #tpu.memory_space<vmem>>, vector<2x346xf32>
    %379 = vector.broadcast %376 : f32 to vector<2x346xf32>
    %380 = arith.mulf %379, %378 : vector<2x346xf32>
    %381 = arith.addf %371, %380 : vector<2x346xf32>
    %c0_174 = arith.constant 0 : index
    %c90_175 = arith.constant 90 : index
    %382 = vector.load %arg5[%c0_174, %c90_175] : memref<2x484xf32, #tpu.memory_space<vmem>>, vector<2x346xf32>
    %383 = vector.broadcast %377 : f32 to vector<2x346xf32>
    %384 = arith.mulf %383, %382 : vector<2x346xf32>
    %385 = arith.addf %375, %384 : vector<2x346xf32>
    %c31 = arith.constant 31 : index
    %386 = memref.load %arg1[%c31] : memref<98xf32, #tpu.memory_space<smem>>
    %c80 = arith.constant 80 : index
    %387 = memref.load %arg1[%c80] : memref<98xf32, #tpu.memory_space<smem>>
    %c0_176 = arith.constant 0 : index
    %c91_177 = arith.constant 91 : index
    %388 = vector.load %arg4[%c0_176, %c91_177] : memref<2x484xf32, #tpu.memory_space<vmem>>, vector<2x346xf32>
    %389 = vector.broadcast %386 : f32 to vector<2x346xf32>
    %390 = arith.mulf %389, %388 : vector<2x346xf32>
    %391 = arith.addf %381, %390 : vector<2x346xf32>
    %c0_178 = arith.constant 0 : index
    %c91_179 = arith.constant 91 : index
    %392 = vector.load %arg5[%c0_178, %c91_179] : memref<2x484xf32, #tpu.memory_space<vmem>>, vector<2x346xf32>
    %393 = vector.broadcast %387 : f32 to vector<2x346xf32>
    %394 = arith.mulf %393, %392 : vector<2x346xf32>
    %395 = arith.addf %385, %394 : vector<2x346xf32>
    %c32 = arith.constant 32 : index
    %396 = memref.load %arg1[%c32] : memref<98xf32, #tpu.memory_space<smem>>
    %c81 = arith.constant 81 : index
    %397 = memref.load %arg1[%c81] : memref<98xf32, #tpu.memory_space<smem>>
    %c0_180 = arith.constant 0 : index
    %c92 = arith.constant 92 : index
    %398 = vector.load %arg4[%c0_180, %c92] : memref<2x484xf32, #tpu.memory_space<vmem>>, vector<2x346xf32>
    %399 = vector.broadcast %396 : f32 to vector<2x346xf32>
    %400 = arith.mulf %399, %398 : vector<2x346xf32>
    %401 = arith.addf %391, %400 : vector<2x346xf32>
    %c0_181 = arith.constant 0 : index
    %c92_182 = arith.constant 92 : index
    %402 = vector.load %arg5[%c0_181, %c92_182] : memref<2x484xf32, #tpu.memory_space<vmem>>, vector<2x346xf32>
    %403 = vector.broadcast %397 : f32 to vector<2x346xf32>
    %404 = arith.mulf %403, %402 : vector<2x346xf32>
    %405 = arith.addf %395, %404 : vector<2x346xf32>
    %c33 = arith.constant 33 : index
    %406 = memref.load %arg1[%c33] : memref<98xf32, #tpu.memory_space<smem>>
    %c82 = arith.constant 82 : index
    %407 = memref.load %arg1[%c82] : memref<98xf32, #tpu.memory_space<smem>>
    %c0_183 = arith.constant 0 : index
    %c93 = arith.constant 93 : index
    %408 = vector.load %arg4[%c0_183, %c93] : memref<2x484xf32, #tpu.memory_space<vmem>>, vector<2x346xf32>
    %409 = vector.broadcast %406 : f32 to vector<2x346xf32>
    %410 = arith.mulf %409, %408 : vector<2x346xf32>
    %411 = arith.addf %401, %410 : vector<2x346xf32>
    %c0_184 = arith.constant 0 : index
    %c93_185 = arith.constant 93 : index
    %412 = vector.load %arg5[%c0_184, %c93_185] : memref<2x484xf32, #tpu.memory_space<vmem>>, vector<2x346xf32>
    %413 = vector.broadcast %407 : f32 to vector<2x346xf32>
    %414 = arith.mulf %413, %412 : vector<2x346xf32>
    %415 = arith.addf %405, %414 : vector<2x346xf32>
    %c34 = arith.constant 34 : index
    %416 = memref.load %arg1[%c34] : memref<98xf32, #tpu.memory_space<smem>>
    %c83 = arith.constant 83 : index
    %417 = memref.load %arg1[%c83] : memref<98xf32, #tpu.memory_space<smem>>
    %c0_186 = arith.constant 0 : index
    %c94 = arith.constant 94 : index
    %418 = vector.load %arg4[%c0_186, %c94] : memref<2x484xf32, #tpu.memory_space<vmem>>, vector<2x346xf32>
    %419 = vector.broadcast %416 : f32 to vector<2x346xf32>
    %420 = arith.mulf %419, %418 : vector<2x346xf32>
    %421 = arith.addf %411, %420 : vector<2x346xf32>
    %c0_187 = arith.constant 0 : index
    %c94_188 = arith.constant 94 : index
    %422 = vector.load %arg5[%c0_187, %c94_188] : memref<2x484xf32, #tpu.memory_space<vmem>>, vector<2x346xf32>
    %423 = vector.broadcast %417 : f32 to vector<2x346xf32>
    %424 = arith.mulf %423, %422 : vector<2x346xf32>
    %425 = arith.addf %415, %424 : vector<2x346xf32>
    %c35 = arith.constant 35 : index
    %426 = memref.load %arg1[%c35] : memref<98xf32, #tpu.memory_space<smem>>
    %c84 = arith.constant 84 : index
    %427 = memref.load %arg1[%c84] : memref<98xf32, #tpu.memory_space<smem>>
    %c0_189 = arith.constant 0 : index
    %c110 = arith.constant 110 : index
    %428 = vector.load %arg4[%c0_189, %c110] : memref<2x484xf32, #tpu.memory_space<vmem>>, vector<2x346xf32>
    %429 = vector.broadcast %426 : f32 to vector<2x346xf32>
    %430 = arith.mulf %429, %428 : vector<2x346xf32>
    %431 = arith.addf %421, %430 : vector<2x346xf32>
    %c0_190 = arith.constant 0 : index
    %c110_191 = arith.constant 110 : index
    %432 = vector.load %arg5[%c0_190, %c110_191] : memref<2x484xf32, #tpu.memory_space<vmem>>, vector<2x346xf32>
    %433 = vector.broadcast %427 : f32 to vector<2x346xf32>
    %434 = arith.mulf %433, %432 : vector<2x346xf32>
    %435 = arith.addf %425, %434 : vector<2x346xf32>
    %c36 = arith.constant 36 : index
    %436 = memref.load %arg1[%c36] : memref<98xf32, #tpu.memory_space<smem>>
    %c85 = arith.constant 85 : index
    %437 = memref.load %arg1[%c85] : memref<98xf32, #tpu.memory_space<smem>>
    %c0_192 = arith.constant 0 : index
    %c111 = arith.constant 111 : index
    %438 = vector.load %arg4[%c0_192, %c111] : memref<2x484xf32, #tpu.memory_space<vmem>>, vector<2x346xf32>
    %439 = vector.broadcast %436 : f32 to vector<2x346xf32>
    %440 = arith.mulf %439, %438 : vector<2x346xf32>
    %441 = arith.addf %431, %440 : vector<2x346xf32>
    %c0_193 = arith.constant 0 : index
    %c111_194 = arith.constant 111 : index
    %442 = vector.load %arg5[%c0_193, %c111_194] : memref<2x484xf32, #tpu.memory_space<vmem>>, vector<2x346xf32>
    %443 = vector.broadcast %437 : f32 to vector<2x346xf32>
    %444 = arith.mulf %443, %442 : vector<2x346xf32>
    %445 = arith.addf %435, %444 : vector<2x346xf32>
    %c37 = arith.constant 37 : index
    %446 = memref.load %arg1[%c37] : memref<98xf32, #tpu.memory_space<smem>>
    %c86 = arith.constant 86 : index
    %447 = memref.load %arg1[%c86] : memref<98xf32, #tpu.memory_space<smem>>
    %c0_195 = arith.constant 0 : index
    %c112 = arith.constant 112 : index
    %448 = vector.load %arg4[%c0_195, %c112] : memref<2x484xf32, #tpu.memory_space<vmem>>, vector<2x346xf32>
    %449 = vector.broadcast %446 : f32 to vector<2x346xf32>
    %450 = arith.mulf %449, %448 : vector<2x346xf32>
    %451 = arith.addf %441, %450 : vector<2x346xf32>
    %c0_196 = arith.constant 0 : index
    %c112_197 = arith.constant 112 : index
    %452 = vector.load %arg5[%c0_196, %c112_197] : memref<2x484xf32, #tpu.memory_space<vmem>>, vector<2x346xf32>
    %453 = vector.broadcast %447 : f32 to vector<2x346xf32>
    %454 = arith.mulf %453, %452 : vector<2x346xf32>
    %455 = arith.addf %445, %454 : vector<2x346xf32>
    %c38 = arith.constant 38 : index
    %456 = memref.load %arg1[%c38] : memref<98xf32, #tpu.memory_space<smem>>
    %c87 = arith.constant 87 : index
    %457 = memref.load %arg1[%c87] : memref<98xf32, #tpu.memory_space<smem>>
    %c0_198 = arith.constant 0 : index
    %c113_199 = arith.constant 113 : index
    %458 = vector.load %arg4[%c0_198, %c113_199] : memref<2x484xf32, #tpu.memory_space<vmem>>, vector<2x346xf32>
    %459 = vector.broadcast %456 : f32 to vector<2x346xf32>
    %460 = arith.mulf %459, %458 : vector<2x346xf32>
    %461 = arith.addf %451, %460 : vector<2x346xf32>
    %c0_200 = arith.constant 0 : index
    %c113_201 = arith.constant 113 : index
    %462 = vector.load %arg5[%c0_200, %c113_201] : memref<2x484xf32, #tpu.memory_space<vmem>>, vector<2x346xf32>
    %463 = vector.broadcast %457 : f32 to vector<2x346xf32>
    %464 = arith.mulf %463, %462 : vector<2x346xf32>
    %465 = arith.addf %455, %464 : vector<2x346xf32>
    %c39 = arith.constant 39 : index
    %466 = memref.load %arg1[%c39] : memref<98xf32, #tpu.memory_space<smem>>
    %c88_202 = arith.constant 88 : index
    %467 = memref.load %arg1[%c88_202] : memref<98xf32, #tpu.memory_space<smem>>
    %c0_203 = arith.constant 0 : index
    %c114 = arith.constant 114 : index
    %468 = vector.load %arg4[%c0_203, %c114] : memref<2x484xf32, #tpu.memory_space<vmem>>, vector<2x346xf32>
    %469 = vector.broadcast %466 : f32 to vector<2x346xf32>
    %470 = arith.mulf %469, %468 : vector<2x346xf32>
    %471 = arith.addf %461, %470 : vector<2x346xf32>
    %c0_204 = arith.constant 0 : index
    %c114_205 = arith.constant 114 : index
    %472 = vector.load %arg5[%c0_204, %c114_205] : memref<2x484xf32, #tpu.memory_space<vmem>>, vector<2x346xf32>
    %473 = vector.broadcast %467 : f32 to vector<2x346xf32>
    %474 = arith.mulf %473, %472 : vector<2x346xf32>
    %475 = arith.addf %465, %474 : vector<2x346xf32>
    %c40 = arith.constant 40 : index
    %476 = memref.load %arg1[%c40] : memref<98xf32, #tpu.memory_space<smem>>
    %c89_206 = arith.constant 89 : index
    %477 = memref.load %arg1[%c89_206] : memref<98xf32, #tpu.memory_space<smem>>
    %c0_207 = arith.constant 0 : index
    %c115 = arith.constant 115 : index
    %478 = vector.load %arg4[%c0_207, %c115] : memref<2x484xf32, #tpu.memory_space<vmem>>, vector<2x346xf32>
    %479 = vector.broadcast %476 : f32 to vector<2x346xf32>
    %480 = arith.mulf %479, %478 : vector<2x346xf32>
    %481 = arith.addf %471, %480 : vector<2x346xf32>
    %c0_208 = arith.constant 0 : index
    %c115_209 = arith.constant 115 : index
    %482 = vector.load %arg5[%c0_208, %c115_209] : memref<2x484xf32, #tpu.memory_space<vmem>>, vector<2x346xf32>
    %483 = vector.broadcast %477 : f32 to vector<2x346xf32>
    %484 = arith.mulf %483, %482 : vector<2x346xf32>
    %485 = arith.addf %475, %484 : vector<2x346xf32>
    %c41 = arith.constant 41 : index
    %486 = memref.load %arg1[%c41] : memref<98xf32, #tpu.memory_space<smem>>
    %c90_210 = arith.constant 90 : index
    %487 = memref.load %arg1[%c90_210] : memref<98xf32, #tpu.memory_space<smem>>
    %c0_211 = arith.constant 0 : index
    %c116 = arith.constant 116 : index
    %488 = vector.load %arg4[%c0_211, %c116] : memref<2x484xf32, #tpu.memory_space<vmem>>, vector<2x346xf32>
    %489 = vector.broadcast %486 : f32 to vector<2x346xf32>
    %490 = arith.mulf %489, %488 : vector<2x346xf32>
    %491 = arith.addf %481, %490 : vector<2x346xf32>
    %c0_212 = arith.constant 0 : index
    %c116_213 = arith.constant 116 : index
    %492 = vector.load %arg5[%c0_212, %c116_213] : memref<2x484xf32, #tpu.memory_space<vmem>>, vector<2x346xf32>
    %493 = vector.broadcast %487 : f32 to vector<2x346xf32>
    %494 = arith.mulf %493, %492 : vector<2x346xf32>
    %495 = arith.addf %485, %494 : vector<2x346xf32>
    %c42 = arith.constant 42 : index
    %496 = memref.load %arg1[%c42] : memref<98xf32, #tpu.memory_space<smem>>
    %c91_214 = arith.constant 91 : index
    %497 = memref.load %arg1[%c91_214] : memref<98xf32, #tpu.memory_space<smem>>
    %c0_215 = arith.constant 0 : index
    %c132 = arith.constant 132 : index
    %498 = vector.load %arg4[%c0_215, %c132] : memref<2x484xf32, #tpu.memory_space<vmem>>, vector<2x346xf32>
    %499 = vector.broadcast %496 : f32 to vector<2x346xf32>
    %500 = arith.mulf %499, %498 : vector<2x346xf32>
    %501 = arith.addf %491, %500 : vector<2x346xf32>
    %c0_216 = arith.constant 0 : index
    %c132_217 = arith.constant 132 : index
    %502 = vector.load %arg5[%c0_216, %c132_217] : memref<2x484xf32, #tpu.memory_space<vmem>>, vector<2x346xf32>
    %503 = vector.broadcast %497 : f32 to vector<2x346xf32>
    %504 = arith.mulf %503, %502 : vector<2x346xf32>
    %505 = arith.addf %495, %504 : vector<2x346xf32>
    %c43 = arith.constant 43 : index
    %506 = memref.load %arg1[%c43] : memref<98xf32, #tpu.memory_space<smem>>
    %c92_218 = arith.constant 92 : index
    %507 = memref.load %arg1[%c92_218] : memref<98xf32, #tpu.memory_space<smem>>
    %c0_219 = arith.constant 0 : index
    %c133 = arith.constant 133 : index
    %508 = vector.load %arg4[%c0_219, %c133] : memref<2x484xf32, #tpu.memory_space<vmem>>, vector<2x346xf32>
    %509 = vector.broadcast %506 : f32 to vector<2x346xf32>
    %510 = arith.mulf %509, %508 : vector<2x346xf32>
    %511 = arith.addf %501, %510 : vector<2x346xf32>
    %c0_220 = arith.constant 0 : index
    %c133_221 = arith.constant 133 : index
    %512 = vector.load %arg5[%c0_220, %c133_221] : memref<2x484xf32, #tpu.memory_space<vmem>>, vector<2x346xf32>
    %513 = vector.broadcast %507 : f32 to vector<2x346xf32>
    %514 = arith.mulf %513, %512 : vector<2x346xf32>
    %515 = arith.addf %505, %514 : vector<2x346xf32>
    %c44_222 = arith.constant 44 : index
    %516 = memref.load %arg1[%c44_222] : memref<98xf32, #tpu.memory_space<smem>>
    %c93_223 = arith.constant 93 : index
    %517 = memref.load %arg1[%c93_223] : memref<98xf32, #tpu.memory_space<smem>>
    %c0_224 = arith.constant 0 : index
    %c134 = arith.constant 134 : index
    %518 = vector.load %arg4[%c0_224, %c134] : memref<2x484xf32, #tpu.memory_space<vmem>>, vector<2x346xf32>
    %519 = vector.broadcast %516 : f32 to vector<2x346xf32>
    %520 = arith.mulf %519, %518 : vector<2x346xf32>
    %521 = arith.addf %511, %520 : vector<2x346xf32>
    %c0_225 = arith.constant 0 : index
    %c134_226 = arith.constant 134 : index
    %522 = vector.load %arg5[%c0_225, %c134_226] : memref<2x484xf32, #tpu.memory_space<vmem>>, vector<2x346xf32>
    %523 = vector.broadcast %517 : f32 to vector<2x346xf32>
    %524 = arith.mulf %523, %522 : vector<2x346xf32>
    %525 = arith.addf %515, %524 : vector<2x346xf32>
    %c45_227 = arith.constant 45 : index
    %526 = memref.load %arg1[%c45_227] : memref<98xf32, #tpu.memory_space<smem>>
    %c94_228 = arith.constant 94 : index
    %527 = memref.load %arg1[%c94_228] : memref<98xf32, #tpu.memory_space<smem>>
    %c0_229 = arith.constant 0 : index
    %c135_230 = arith.constant 135 : index
    %528 = vector.load %arg4[%c0_229, %c135_230] : memref<2x484xf32, #tpu.memory_space<vmem>>, vector<2x346xf32>
    %529 = vector.broadcast %526 : f32 to vector<2x346xf32>
    %530 = arith.mulf %529, %528 : vector<2x346xf32>
    %531 = arith.addf %521, %530 : vector<2x346xf32>
    %c0_231 = arith.constant 0 : index
    %c135_232 = arith.constant 135 : index
    %532 = vector.load %arg5[%c0_231, %c135_232] : memref<2x484xf32, #tpu.memory_space<vmem>>, vector<2x346xf32>
    %533 = vector.broadcast %527 : f32 to vector<2x346xf32>
    %534 = arith.mulf %533, %532 : vector<2x346xf32>
    %535 = arith.addf %525, %534 : vector<2x346xf32>
    %c46_233 = arith.constant 46 : index
    %536 = memref.load %arg1[%c46_233] : memref<98xf32, #tpu.memory_space<smem>>
    %c95 = arith.constant 95 : index
    %537 = memref.load %arg1[%c95] : memref<98xf32, #tpu.memory_space<smem>>
    %c0_234 = arith.constant 0 : index
    %c136 = arith.constant 136 : index
    %538 = vector.load %arg4[%c0_234, %c136] : memref<2x484xf32, #tpu.memory_space<vmem>>, vector<2x346xf32>
    %539 = vector.broadcast %536 : f32 to vector<2x346xf32>
    %540 = arith.mulf %539, %538 : vector<2x346xf32>
    %541 = arith.addf %531, %540 : vector<2x346xf32>
    %c0_235 = arith.constant 0 : index
    %c136_236 = arith.constant 136 : index
    %542 = vector.load %arg5[%c0_235, %c136_236] : memref<2x484xf32, #tpu.memory_space<vmem>>, vector<2x346xf32>
    %543 = vector.broadcast %537 : f32 to vector<2x346xf32>
    %544 = arith.mulf %543, %542 : vector<2x346xf32>
    %545 = arith.addf %535, %544 : vector<2x346xf32>
    %c47_237 = arith.constant 47 : index
    %546 = memref.load %arg1[%c47_237] : memref<98xf32, #tpu.memory_space<smem>>
    %c96 = arith.constant 96 : index
    %547 = memref.load %arg1[%c96] : memref<98xf32, #tpu.memory_space<smem>>
    %c0_238 = arith.constant 0 : index
    %c137 = arith.constant 137 : index
    %548 = vector.load %arg4[%c0_238, %c137] : memref<2x484xf32, #tpu.memory_space<vmem>>, vector<2x346xf32>
    %549 = vector.broadcast %546 : f32 to vector<2x346xf32>
    %550 = arith.mulf %549, %548 : vector<2x346xf32>
    %551 = arith.addf %541, %550 : vector<2x346xf32>
    %c0_239 = arith.constant 0 : index
    %c137_240 = arith.constant 137 : index
    %552 = vector.load %arg5[%c0_239, %c137_240] : memref<2x484xf32, #tpu.memory_space<vmem>>, vector<2x346xf32>
    %553 = vector.broadcast %547 : f32 to vector<2x346xf32>
    %554 = arith.mulf %553, %552 : vector<2x346xf32>
    %555 = arith.addf %545, %554 : vector<2x346xf32>
    %c48_241 = arith.constant 48 : index
    %556 = memref.load %arg1[%c48_241] : memref<98xf32, #tpu.memory_space<smem>>
    %c97 = arith.constant 97 : index
    %557 = memref.load %arg1[%c97] : memref<98xf32, #tpu.memory_space<smem>>
    %c0_242 = arith.constant 0 : index
    %c138 = arith.constant 138 : index
    %558 = vector.load %arg4[%c0_242, %c138] : memref<2x484xf32, #tpu.memory_space<vmem>>, vector<2x346xf32>
    %559 = vector.broadcast %556 : f32 to vector<2x346xf32>
    %560 = arith.mulf %559, %558 : vector<2x346xf32>
    %561 = arith.addf %551, %560 : vector<2x346xf32>
    %c0_243 = arith.constant 0 : index
    %c138_244 = arith.constant 138 : index
    %562 = vector.load %arg5[%c0_243, %c138_244] : memref<2x484xf32, #tpu.memory_space<vmem>>, vector<2x346xf32>
    %563 = vector.broadcast %557 : f32 to vector<2x346xf32>
    %564 = arith.mulf %563, %562 : vector<2x346xf32>
    %565 = arith.addf %555, %564 : vector<2x346xf32>
    %566 = arith.addf %561, %565 : vector<2x346xf32>
    %567 = arith.negf %566 : vector<2x346xf32>
    %568 = math.exp %567 : vector<2x346xf32>
    %cst_245 = arith.constant 1.000000e+00 : f32
    %569 = vector.broadcast %cst_245 : f32 to vector<2x346xf32>
    %570 = arith.addf %569, %568 : vector<2x346xf32>
    %571 = arith.divf %569, %570 : vector<2x346xf32>
    %572 = arith.index_cast %1 : i32 to index
    %c0_246 = arith.constant 0 : index
    %573 = vector.load %arg3[%572, %c0_246] : memref<2x352xf32, #tpu.memory_space<vmem>>, vector<2x346xf32>
    tpu.vector_store %arg3[%572, %c0_246], %571 {strides = array<i32>} : memref<2x352xf32, #tpu.memory_space<vmem>>, vector<2x346xf32>,
    %c1_i32 = arith.constant 1 : i32
    %cst_247 = arith.constant 0.000000e+00 : f32
    %574 = vector.broadcast %cst_247 : f32 to vector<2x6xf32>
    %c0_248 = arith.constant 0 : index
    %c346 = arith.constant 346 : index
    %575 = vector.load %arg3[%c0_248, %c346] : memref<2x352xf32, #tpu.memory_space<vmem>>, vector<2x6xf32>
    tpu.vector_store %arg3[%c0_248, %c346], %574 {strides = array<i32>} : memref<2x352xf32, #tpu.memory_space<vmem>>, vector<2x6xf32>,
    return
  }
  func.func @transform_0(%arg0: i32) -> i32 {
    %c0_i32 = arith.constant 0 : i32
    %c0_i32_0 = arith.constant 0 : i32
    return %c0_i32 : i32
  }
  func.func @transform_1(%arg0: i32) -> (i32, i32, i32) {
    %c0_i32 = arith.constant 0 : i32
    %c0_i32_0 = arith.constant 0 : i32
    %c0_i32_1 = arith.constant 0 : i32
    return %arg0, %c0_i32, %c0_i32_0 : i32, i32, i32
  }
  func.func @transform_2(%arg0: i32) -> (i32, i32) {
    %c0_i32 = arith.constant 0 : i32
    %c0_i32_0 = arith.constant 0 : i32
    return %arg0, %c0_i32 : i32, i32
  }
}

</mosaic_0001>

<bundles_post_ra>
// kernel: tpu_custom_call.1
= control target key start
LH: loop header
LB: loop body
LE: loop exit
PB: predicated region body
PF: predicated region fallthrough
CT: control target
= control target key end

     0   :  { %7 = vsyncpa [#allocation7], 0  ;;  %s2237_s0 = inlined_call_operand.hbm [shape: f32[98], index: 0, kind: input, shape index: {}]   ;;  %s2238_s1 = inlined_call_operand.hbm [shape: f32[2,4,256], index: 1, kind: input, shape index: {}]   ;;  %s2239_s2 = inlined_call_operand.hbm [shape: f32[2,352], index: 2, kind: output, shape index: {}]  }
   0x1   :  { %8 = vsyncpa [#allocation5], 0 }
   0x2   :  { %9 = vsyncpa [#allocation6], 0  ;;  %s1594_s11 = scalar_lea.hbm %s2237_s0, 16 }
   0x3   :  { %p1595_p0 = scmp.ne.s32.totalorder %s2237_s0, %s1594_s11  ;;  %p1598_p1 = scmp.lt.u32.totalorder %s1594_s11, %s2237_s0 }
   0x5   :  { %p1600_p2 = pnand %p1598_p1, %p1595_p0 }
   0x7   :  { %1603 = shalt.err (!%p1600_p2)
}
   0x8   :  { %s1654_s16 = smov [#allocation4]   ;;  %s1655_s19 = smov [#allocation8]  }
   0x9   :  { %17 = dma.hbm_to_smem %s2237_s0, 16, %s1654_s16, [#allocation7]  }
   0xa   :  { %s23_s20 = sshll.u32 %s1655_s19, 4  ;;  %s1604_s23 = scalar_lea.hbm %s2238_s1, 256  ;;  %s24_s20 = int_to_ptr.vmem [resolvable:$true] %s23_s20 }
   0xb   :  { %p1605_p3 = scmp.ne.s32.totalorder %s2238_s1, %s1604_s23  ;;  %p1608_p4 = scmp.lt.u32.totalorder %s1604_s23, %s2238_s1 }
   0xd   :  { %p1610_p5 = pnand %p1608_p4, %p1605_p3 }
   0xf   :  { %1613 = shalt.err (!%p1610_p5)
}
  0x10   :  { %s1614_s28 = scalar_lea.vmem %s24_s20, 256  ;;  %p1619_p7 = scmp.lt.s32.totalorder %s24_s20, %s24_s20 }
  0x11   :  { %p1615_p6 = scmp.ne.s32.totalorder %s24_s20, %s1614_s28  ;;  %p1620_p8 = scmp.lt.s32.totalorder %s1614_s28, %s1614_s28 }
  0x13   :  { %p1621_p9 = por %p1620_p8, %p1619_p7 }
  0x15   :  { %p1622_p10 = pnand %p1621_p9, %p1615_p6 }
  0x17   :  { %1625 = shalt.err (!%p1622_p10)
}
  0x18   :  { %s1656_s0 = smov 128   ;;  %s1657_s29 = smov 8  }
  0x19   :  { %29 = dma.hbm_to_vmem [thread:$0]  %s2238_s1, 256, %s24_s20, [#allocation5], %s1656_s0, %s1656_s0, %s1657_s29  }
  0x1a   :  { %1648 = dma.done.wait [#allocation7], 16  }
  0x1b   :  { %1649 = vsyncadd [#allocation7], 4294967280 }
  0x1c   :  { %1650 = dma.done.wait [#allocation5], 256  }
  0x1d   :  { %1651 = vsyncadd [#allocation5], 4294967040 }
  0x1e   :  { %36 = sfence }
  0x1f   :  { %v40_v0 = vld [vmem:[#allocation8] sm:$0xff]  ;;  %v41_v1 = vld [vmem:[#allocation8 + $0x8] sm:$0xff]  ;;  %vm48_vm0 = vcmask 1043456   ;;  %v119_v2 = vlaneseq  ;;  %v1658_v5 = vmov 1983009808   ;;  %vm105_vm1 = vcmask 1041408  }
  0x20   :  { %v49_v3 = vsel %vm48_vm0, %v40_v0, 0.0  ;;  %v63_v4 = vsel %vm48_vm0, %v41_v1, 0.0  ;;  %v117_v6 = vunpack.c.l.s4 %v1658_v5  ;;  %v77_v11 = vsel %vm48_vm0, %v40_v0, -inf  ;;  %s1660_s1 = smov 69   ;;  %s1661_s4 = smov 81  }
  0x21   :  { %v50_v7 = vrot.slane %v49_v3, 4  ;;  %v64_v8 = vrot.slane %v63_v4, 4  ;;  %v120_v9 = vshrl.u32 %v119_v2, 7  ;;  %v91_v12 = vsel %vm48_vm0, %v41_v1, -inf  ;;  %s1662_s5 = smov 75   ;;  %s1663_s6 = smov 87  }
  0x22   :  { %v118_v10 = vunpack.c.0.s8 %v117_v6  ;;  %v78_v15 = vrot.slane %v77_v11, 4  ;;  %v92_v16 = vrot.slane %v91_v12, 4  ;;  %v44_v18 = vcombine.high %v40_v0, %v40_v0  ;;  %s1664_s7 = smov 93   ;;  %s1665_s8 = smov 99  }
  0x23   :  { %v51_v13 = vadd.f32 %v50_v7, %v49_v3  ;;  %v65_v14 = vadd.f32 %v64_v8, %v63_v4  ;;  %v45_v19 = vcombine.high %v41_v1, %v41_v1  ;;  %vm135_vm2 = vcmask 1041409   ;;  %s1666_s9 = smov 117   ;;  %s1667_s10 = smov 105  }
  0x24   :  { %v1761_v17 = vsub.s32 %v118_v10, %v120_v9  ;;  %v79_v22 = vmax.f32 %v77_v11, %v78_v15  ;;  %v93_v23 = vmax.f32 %v91_v12, %v92_v16  ;;  %v84_v24 = vsel %vm48_vm0, %v44_v18, -inf  ;;  %s1668_s11 = smov 111   ;;  %s1669_s12 = smov 123  }
  0x25   :  { %v52_v20 = vrot.slane %v51_v13, 2  ;;  %v66_v21 = vrot.slane %v65_v14, 2  ;;  %v98_v25 = vsel %vm48_vm0, %v45_v19, -inf  ;;  %v56_v26 = vsel %vm48_vm0, %v44_v18, 0.0  ;;  %s1670_s13 = smov 1   ;;  %s1671_s14 = smov 7  }
  0x26   :  { %v70_v27 = vsel %vm48_vm0, %v45_v19, 0.0  ;;  %vm137_vm3 = vcmask 1043459   ;;  %v80_v30 = vrot.slane %v79_v22, 2  ;;  %v94_v31 = vrot.slane %v93_v23, 2  ;;  %s1672_s15 = smov 25   ;;  %s1673_s16 = smov 13  }
  0x27   :  { %v53_v28 = vadd.f32 %v52_v20, %v51_v13  ;;  %v67_v29 = vadd.f32 %v66_v21, %v65_v14  ;;  %v85_v32 = vrot.slane %v84_v24, 4  ;;  %v99_v33 = vrot.slane %v98_v25, 4  ;;  %s1674_s17 = smov 19   ;;  %s1675_s18 = smov 31  }
  0x28   :  { %v57_v34 = vrot.slane %v56_v26, 4  ;;  %v71_v35 = vrot.slane %v70_v27, 4  ;;  %v81_v38 = vmax.f32 %v79_v22, %v80_v30  ;;  %v95_v39 = vmax.f32 %v93_v23, %v94_v31  ;;  %s1428_s19 = sld [smem:[#allocation4 + $0x32]]  ;;  %s1427_s20 = sld [smem:[#allocation4 + $0x1]] }
  0x29   :  { %v54_v36 = vrot.slane %v53_v28, 1  ;;  %v68_v37 = vrot.slane %v67_v29, 1  ;;  %v86_v40 = vmax.f32 %v84_v24, %v85_v32  ;;  %v100_v41 = vmax.f32 %v98_v25, %v99_v33  ;;  %s1430_s21 = sld [smem:[#allocation4 + $0x33]]  ;;  %s1429_s22 = sld [smem:[#allocation4 + $0x2]] }
  0x2a   :  { %v58_v42 = vadd.f32 %v57_v34, %v56_v26  ;;  %v72_v43 = vadd.f32 %v71_v35, %v70_v27  ;;  %v82_v46 = vrot.slane %v81_v38, 1  ;;  %v96_v47 = vrot.slane %v95_v39, 1  ;;  %s1432_s23 = sld [smem:[#allocation4 + $0x34]]  ;;  %s1431_s24 = sld [smem:[#allocation4 + $0x3]] }
  0x2b   :  { %v55_v44 = vadd.f32 %v54_v36, %v53_v28  ;;  %v69_v45 = vadd.f32 %v68_v37, %v67_v29  ;;  %v87_v48 = vrot.slane %v86_v40, 2  ;;  %v101_v49 = vrot.slane %v100_v41, 2  ;;  %s1434_s25 = sld [smem:[#allocation4 + $0x35]]  ;;  %s1433_s26 = sld [smem:[#allocation4 + $0x4]] }
  0x2c   :  { %v59_v50 = vrot.slane %v58_v42, 2  ;;  %v73_v51 = vrot.slane %v72_v43, 2  ;;  %v83_v54 = vmax.f32 %v81_v38, %v82_v46  ;;  %v97_v55 = vmax.f32 %v95_v39, %v96_v47  ;;  %s1676_s27 = smov 127   ;;  %s1436_s28 = sld [smem:[#allocation4 + $0x36]] }
  0x2d   :  { %v122_v52 = vrot.slane %v55_v44, %v1761_v17  ;;  %v129_v53 = vrot.slane %v69_v45, %v1761_v17  ;;  %vm139_vm4 = vcmask 1045509   ;;  %vm141_vm5 = vcmask 1047559   ;;  %s1435_s0 = sld [smem:[#allocation4 + $0x5]]  ;;  %s1677_s29 = smov 126  }
  0x2e   :  { %v102_v56 = vmax.f32 %v100_v41, %v101_v49  ;;  %v74_v57 = vadd.f32 %v73_v51, %v72_v43  ;;  %v156_v59 = vrot.slane %v83_v54, %v1761_v17  ;;  %v163_v60 = vrot.slane %v97_v55, %v1761_v17  ;;  %s1438_s30 = sld [smem:[#allocation4 + $0x37]]  ;;  %s1437_s3 = sld [smem:[#allocation4 + $0x6]] }
  0x2f   :  { %v134_v58 = vrot.slane %v129_v53, 7  ;;  %vm106_vm6 = vcmask 1043458   ;;  %v88_v61 = vmax.f32 %v86_v40, %v87_v48  ;;  %v60_v63 = vadd.f32 %v59_v50, %v58_v42 }
  0x30   :  { %v103_v62 = vrot.slane %v102_v56, 1  ;;  %v75_v0 = vrot.slane %v74_v57, 1  ;;  %vm1772_vm7 = vmor %vm106_vm6, %vm105_vm1  ;;  %v166_v3 = vrot.slane %v163_v60, 7  ;;  %vm108_vm8 = vcmask 1045508  }
  0x31   :  { %v136_v2 = vsel %vm135_vm2, %v134_v58, %v122_v52  ;;  %vm110_vm9 = vcmask 818182   ;;  %vm109_vm10 = vmor %vm108_vm8, %vm1772_vm7  ;;  %v89_v9 = vrot.slane %v88_v61, 1  ;;  %v1659_v10 = vmov 0.0  }
  0x32   :  { %v138_v4 = vsel %vm137_vm3, %v134_v58, %v136_v2  ;;  %v167_v6 = vsel %vm135_vm2, %v166_v3, %v156_v59  ;;  %vm111_vm11 = vmor %vm110_vm9, %vm109_vm10  ;;  %v104_v12 = vmax.f32 %v102_v56, %v103_v62  ;;  %v61_v13 = vrot.slane %v60_v63, 1 }
  0x33   :  { %v140_v5 = vsel %vm139_vm4, %v134_v58, %v138_v4  ;;  %v168_v8 = vsel %vm137_vm3, %v166_v3, %v167_v6  ;;  %112 = vst.msk [vmem:[#allocation2] sm:$0xff] %vm111_vm11, %v1659_v10  ;;  %113 = vst.msk [vmem:[#allocation3] sm:$0xff] %vm111_vm11, %v1659_v10  ;;  %v76_v14 = vadd.f32 %v75_v0, %v74_v57  ;;  %vm146_vm12 = vcmask 689704  }
  0x34   :  { %v142_v7 = vsel %vm141_vm5, %v134_v58, %v140_v5  ;;  %v169_v11 = vsel %vm139_vm4, %v166_v3, %v168_v8  ;;  %v90_v16 = vmax.f32 %v88_v61, %v89_v9  ;;  %v293_v18 = vrot.slane %v104_v12, %v1761_v17 }
  0x35   :  { %143 = vrot.lane.b32.xlu1 %v142_v7, %s1660_s1  ;;  %184 = vrot.lane.b32.xlu0 %v142_v7, %s1661_s4  ;;  %v170_v15 = vsel %vm141_vm5, %v166_v3, %v169_v11  ;;  %v62_v19 = vadd.f32 %v61_v13, %v60_v63  ;;  %v260_v20 = vrot.slane %v76_v14, %v1761_v17  ;;  %vm190_vm13 = vcmask 1042312  }
  0x36   :  { %v286_v21 = vrot.slane %v90_v16, %v1761_v17  ;;  %v296_v22 = vrot.slane %v293_v18, 7  ;;  %vm191_vm14 = vcmask 3074   ;;  %vm187_vm15 = vcmask 662528  }
  0x37   :  { %v253_v23 = vrot.slane %v62_v19, %v1761_v17  ;;  %v263_v24 = vrot.slane %v260_v20, 7  ;;  %vm178_vm0 = vcmask 870104   ;;  %vm192_vm1 = vmor %vm191_vm14, %vm190_vm13  ;;  %vm274_vm6 = vcmask 1042344  }
  0x38   :  { %v297_v25 = vsel %vm135_vm2, %v296_v22, %v286_v21  ;;  %vm275_vm8 = vcmask 35842   ;;  %vm271_vm9 = vcmask 957440   ;;  %vm239_vm10 = vcmask 902904  }
  0x39   :  { %171 = vrot.lane.b32.xlu1 %v170_v15, %s1660_s1  ;;  %194 = vrot.lane.b32.xlu0 %v170_v15, %s1661_s4  ;;  %v264_v26 = vsel %vm135_vm2, %v263_v24, %v253_v23  ;;  %v298_v27 = vsel %vm137_vm3, %v296_v22, %v297_v25  ;;  %vm203_vm2 = vcmask 181304   ;;  %vm276_vm11 = vmor %vm275_vm8, %vm274_vm6  ;;  %vm319_vm13 = vcmask 394504   ;;  %s1678_s1 = smov 125  }
  0x3a   :  { %v265_v28 = vsel %vm137_vm3, %v263_v24, %v264_v26  ;;  %v299_v29 = vsel %vm139_vm4, %v296_v22, %v298_v27  ;;  %vm212_vm3 = vcmask 361704   ;;  %vm328_vm14 = vcmask 574904  }
  0x3b   :  { %v266_v30 = vsel %vm139_vm4, %v263_v24, %v265_v28  ;;  %v300_v17 = vsel %vm141_vm5, %v296_v22, %v299_v29  ;;  %vm221_vm4 = vcmask 542104   ;;  %vm371_vm6 = vcmask 246904  }
  0x3c   :  { %v267_v31 = vsel %vm141_vm5, %v263_v24, %v266_v30  ;;  %vm230_vm5 = vcmask 722504   ;;  %v399_v14 = vstv %s1428_s19  ;;  %v420_v21 = vstv %s1430_s21  ;;  %s1448_s19 = sld [smem:[#allocation4 + $0x3c]]  ;;  %s1450_s21 = sld [smem:[#allocation4 + $0x3d]] }
  0x3d   :  { %180 = vrot.lane.b32.xlu1 %v170_v15, %s1662_s5  ;;  %175 = vrot.lane.b32.xlu0 %v142_v7, %s1662_s5  ;;  %v410_v22 = vstv %s1429_s22  ;;  %v441_v25 = vstv %s1432_s23  ;;  %s1440_s5 = sld [smem:[#allocation4 + $0x38]]  ;;  %s1449_s22 = sld [smem:[#allocation4 + $0xc]]  ;;  %vm395_vm8 = vcmask 1039360  }
  0x3e   :  { %v431_v26 = vstv %s1431_s24  ;;  %v462_v29 = vstv %s1434_s25  ;;  %v452_v30 = vstv %s1433_s26  ;;  %s1682_s23 = smov 104   ;;  %s1452_s24 = sld [smem:[#allocation4 + $0x3e]] }
  0x3f   :  { %s1451_s25 = sld [smem:[#allocation4 + $0xd]]  ;;  %s1454_s26 = sld [smem:[#allocation4 + $0x3f]] }
  0x41   :  { %205 = vrot.lane.b32.xlu1 %v170_v15, %s1663_s6  ;;  %200 = vrot.lane.b32.xlu0 %v142_v7, %s1663_s6  ;;  %s1439_s6 = sld [smem:[#allocation4 + $0x7]] }
  0x45   :  { %214 = vrot.lane.b32.xlu1 %v170_v15, %s1664_s7  ;;  %209 = vrot.lane.b32.xlu0 %v142_v7, %s1664_s7  ;;  %s1679_s7 = smov 124  }
  0x49   :  { %223 = vrot.lane.b32.xlu1 %v170_v15, %s1665_s8  ;;  %218 = vrot.lane.b32.xlu0 %v142_v7, %s1665_s8  ;;  %s1442_s8 = sld [smem:[#allocation4 + $0x39]] }
  0x4d   :  { %301 = vrot.lane.b32.xlu1 %v300_v17, %s1666_s9  ;;  %268 = vrot.lane.b32.xlu0 %v267_v31, %s1666_s9  ;;  %s1441_s9 = sld [smem:[#allocation4 + $0x8]] }
  0x51   :  { %232 = vrot.lane.b32.xlu1 %v170_v15, %s1667_s10  ;;  %227 = vrot.lane.b32.xlu0 %v142_v7, %s1667_s10 }
  0x55   :  { %241 = vrot.lane.b32.xlu1 %v170_v15, %s1668_s11  ;;  %236 = vrot.lane.b32.xlu0 %v142_v7, %s1668_s11  ;;  %v389_v15 = vstv %s1427_s20  ;;  %s1444_s11 = sld [smem:[#allocation4 + $0x3a]]  ;;  %s1447_s20 = sld [smem:[#allocation4 + $0xb]] }
  0x59   :  { %312 = vrot.lane.b32.xlu1 %v300_v17, %s1669_s12  ;;  %307 = vrot.lane.b32.xlu0 %v267_v31, %s1669_s12 }
  0x5d   :  { %321 = vrot.lane.b32.xlu1 %v300_v17, %s1670_s13  ;;  %316 = vrot.lane.b32.xlu0 %v267_v31, %s1670_s13  ;;  %s1443_s13 = sld [smem:[#allocation4 + $0x9]] }
  0x61   :  { %330 = vrot.lane.b32.xlu1 %v300_v17, %s1671_s14  ;;  %325 = vrot.lane.b32.xlu0 %v267_v31, %s1671_s14  ;;  %s1680_s14 = smov 122  }
  0x65   :  { %362 = vrot.lane.b32.xlu1 %v300_v17, %s1672_s15  ;;  %352 = vrot.lane.b32.xlu0 %v267_v31, %s1672_s15  ;;  %s1446_s15 = sld [smem:[#allocation4 + $0x3b]] }
  0x69   :  { %339 = vrot.lane.b32.xlu1 %v300_v17, %s1673_s16  ;;  %334 = vrot.lane.b32.xlu0 %v267_v31, %s1673_s16 }
  0x6d   :  { %348 = vrot.lane.b32.xlu1 %v300_v17, %s1674_s17  ;;  %343 = vrot.lane.b32.xlu0 %v267_v31, %s1674_s17  ;;  %s1445_s17 = sld [smem:[#allocation4 + $0xa]] }
  0x71   :  { %373 = vrot.lane.b32.xlu1 %v300_v17, %s1675_s18  ;;  %368 = vrot.lane.b32.xlu0 %v267_v31, %s1675_s18  ;;  %s1681_s18 = smov 106  }
  0xa7   :  { %v144_v32 = vpop.permute.xlu1 %143  ;;  %v185_v33 = vpop.permute.xlu0 %184 }
  0xa8   :  { %147 = vst.msk [vmem:[#allocation2] sm:$0x3] %vm146_vm12, %v144_v32  ;;  %v186_v36 = vrot.slane %v185_v33, 6  ;;  %v483_v32 = vstv %s1436_s28  ;;  %s1684_s28 = smov 102  }
  0xaa   :  { %v188_v40 = vsel %vm187_vm15, %v186_v36, %v185_v33  ;;  %v473_v33 = vstv %s1435_s0  ;;  %v504_v36 = vstv %s1438_s30  ;;  %s1456_s0 = sld [smem:[#allocation4 + $0x40]]  ;;  %s1685_s30 = smov 101  }
  0xab   :  { %v172_v34 = vpop.permute.xlu1 %171  ;;  %v195_v35 = vpop.permute.xlu0 %194 }
  0xac   :  { %174 = vst.msk [vmem:[#allocation3] sm:$0x3] %vm146_vm12, %v172_v34  ;;  %v196_v37 = vrot.slane %v195_v35, 6  ;;  %vm310_vm12 = vcmask 214104  }
  0xae   :  { %v197_v41 = vsel %vm187_vm15, %v196_v37, %v195_v35  ;;  %v494_v37 = vstv %s1437_s3  ;;  %s1458_s3 = sld [smem:[#allocation4 + $0x41]] }
  0xaf   :  { %v181_v38 = vpop.permute.xlu1 %180  ;;  %v176_v39 = vpop.permute.xlu0 %175 }
  0xb0   :  { %183 = vst.msk [vmem:[#allocation3] sm:$0x3] %vm178_vm0, %v181_v38  ;;  %179 = vst.msk [vmem:[#allocation2] sm:$0x3] %vm178_vm0, %v176_v39  ;;  %vm337_vm0 = vcmask 755304  }
  0xb1   :  { %199 = vst.msk [vmem:[#allocation3] sm:$0xf] %vm192_vm1, %v197_v41  ;;  %193 = vst.msk [vmem:[#allocation2] sm:$0xf] %vm192_vm1, %v188_v40  ;;  %vm358_vm1 = vcmask 1042376   ;;  %v525_v40 = vstv %s1440_s5  ;;  %v515_v41 = vstv %s1439_s6  ;;  %s1686_s5 = smov 100  }
  0xb2   :  { %s1460_s6 = sld [smem:[#allocation4 + $0x42]] }
  0xb3   :  { %v206_v42 = vpop.permute.xlu1 %205  ;;  %v201_v43 = vpop.permute.xlu0 %200 }
  0xb4   :  { %208 = vst.msk [vmem:[#allocation3 + $0x2] sm:$0x3] %vm203_vm2, %v206_v42  ;;  %204 = vst.msk [vmem:[#allocation2 + $0x2] sm:$0x3] %vm203_vm2, %v201_v43  ;;  %vm359_vm2 = vcmask 68610  }
  0xb7   :  { %v215_v44 = vpop.permute.xlu1 %214  ;;  %v210_v45 = vpop.permute.xlu0 %209 }
  0xb8   :  { %217 = vst.msk [vmem:[#allocation3 + $0x2] sm:$0x3] %vm212_vm3, %v215_v44  ;;  %213 = vst.msk [vmem:[#allocation2 + $0x2] sm:$0x3] %vm212_vm3, %v210_v45  ;;  %vm355_vm3 = vcmask 203776   ;;  %v546_v44 = vstv %s1442_s8  ;;  %v536_v45 = vstv %s1441_s9  ;;  %s1459_s8 = sld [smem:[#allocation4 + $0x11]] }
  0xb9   :  { %s1687_s9 = smov 84  }
  0xbb   :  { %v224_v46 = vpop.permute.xlu1 %223  ;;  %v219_v47 = vpop.permute.xlu0 %218 }
  0xbc   :  { %226 = vst.msk [vmem:[#allocation3 + $0x2] sm:$0x3] %vm221_vm4, %v224_v46  ;;  %222 = vst.msk [vmem:[#allocation2 + $0x2] sm:$0x3] %vm221_vm4, %v219_v47  ;;  %vm346_vm4 = vcmask 935704  }
  0xbf   :  { %v302_v48 = vpop.permute.xlu1 %301  ;;  %v269_v49 = vpop.permute.xlu0 %268 }
  0xc0   :  { %v303_v52 = vrot.slane %v302_v48, 6  ;;  %v270_v53 = vrot.slane %v269_v49, 6 }
  0xc2   :  { %v304_v56 = vsel %vm271_vm9, %v303_v52, %v302_v48  ;;  %v272_v57 = vsel %vm271_vm9, %v270_v53, %v269_v49  ;;  %v567_v48 = vstv %s1444_s11  ;;  %v557_v49 = vstv %s1443_s13  ;;  %s1462_s11 = sld [smem:[#allocation4 + $0x43]]  ;;  %s1461_s13 = sld [smem:[#allocation4 + $0x12]] }
  0xc3   :  { %v233_v50 = vpop.permute.xlu1 %232  ;;  %v228_v51 = vpop.permute.xlu0 %227  ;;  %v588_v52 = vstv %s1446_s15  ;;  %v578_v53 = vstv %s1445_s17  ;;  %s1688_s15 = smov 83   ;;  %s1464_s17 = sld [smem:[#allocation4 + $0x44]]  ;;  %vm416_vm9 = vcmask 1031168  }
  0xc4   :  { %235 = vst.msk [vmem:[#allocation3 + $0x2] sm:$0x3] %vm230_vm5, %v233_v50  ;;  %231 = vst.msk [vmem:[#allocation2 + $0x2] sm:$0x3] %vm230_vm5, %v228_v51 }
  0xc5   :  { %vm360_vm5 = vmor %vm359_vm2, %vm358_vm1  ;;  %vm563_vm1 = vcmask 850944   ;;  %vm584_vm2 = vcmask 842752  }
  0xc7   :  { %v242_v54 = vpop.permute.xlu1 %241  ;;  %v237_v55 = vpop.permute.xlu0 %236 }
  0xc8   :  { %244 = vst.msk [vmem:[#allocation3 + $0x2] sm:$0x3] %vm239_vm10, %v242_v54  ;;  %240 = vst.msk [vmem:[#allocation2 + $0x2] sm:$0x3] %vm239_vm10, %v237_v55  ;;  %vm437_vm10 = vcmask 1022976  }
  0xc9   :  { %306 = vst.msk [vmem:[#allocation3 + $0x2] sm:$0xf] %vm276_vm11, %v304_v56  ;;  %277 = vst.msk [vmem:[#allocation2 + $0x2] sm:$0xf] %vm276_vm11, %v272_v57  ;;  %v609_v56 = vstv %s1448_s19  ;;  %v599_v57 = vstv %s1447_s20  ;;  %s1689_s19 = smov 82   ;;  %s1466_s20 = sld [smem:[#allocation4 + $0x45]] }
  0xca   :  { %vm458_vm11 = vcmask 1014784  }
  0xcb   :  { %v313_v58 = vpop.permute.xlu1 %312  ;;  %v308_v59 = vpop.permute.xlu0 %307 }
  0xcc   :  { %315 = vst.msk [vmem:[#allocation3 + $0x4] sm:$0x3] %vm310_vm12, %v313_v58  ;;  %311 = vst.msk [vmem:[#allocation2 + $0x4] sm:$0x3] %vm310_vm12, %v308_v59  ;;  %vm479_vm12 = vcmask 1006592  }
  0xcf   :  { %v322_v60 = vpop.permute.xlu1 %321  ;;  %v317_v61 = vpop.permute.xlu0 %316 }
  0xd0   :  { %324 = vst.msk [vmem:[#allocation3 + $0x4] sm:$0x3] %vm319_vm13, %v322_v60  ;;  %320 = vst.msk [vmem:[#allocation2 + $0x4] sm:$0x3] %vm319_vm13, %v317_v61  ;;  %v630_v60 = vstv %s1450_s21  ;;  %v620_v61 = vstv %s1449_s22  ;;  %s1465_s21 = sld [smem:[#allocation4 + $0x14]]  ;;  %s1468_s22 = sld [smem:[#allocation4 + $0x46]] }
  0xd1   :  { %vm500_vm13 = vcmask 998400  }
  0xd3   :  { %v331_v62 = vpop.permute.xlu1 %330  ;;  %v326_v63 = vpop.permute.xlu0 %325 }
  0xd4   :  { %333 = vst.msk [vmem:[#allocation3 + $0x4] sm:$0x3] %vm328_vm14, %v331_v62  ;;  %329 = vst.msk [vmem:[#allocation2 + $0x4] sm:$0x3] %vm328_vm14, %v326_v63  ;;  %vm521_vm14 = vcmask 867328  }
  0xd7   :  { %v363_v0 = vpop.permute.xlu1 %362  ;;  %v353_v2 = vpop.permute.xlu0 %352 }
  0xd8   :  { %v364_v5 = vrot.slane %v363_v0, 6  ;;  %v354_v6 = vrot.slane %v353_v2, 6 }
  0xda   :  { %v365_v9 = vsel %vm355_vm3, %v364_v5, %v363_v0  ;;  %v356_v11 = vsel %vm355_vm3, %v354_v6, %v353_v2  ;;  %v651_v0 = vstv %s1452_s24  ;;  %v641_v2 = vstv %s1451_s25  ;;  %s1690_s24 = smov 80   ;;  %s1470_s25 = sld [smem:[#allocation4 + $0x47]] }
  0xdb   :  { %v340_v3 = vpop.permute.xlu1 %339  ;;  %v335_v4 = vpop.permute.xlu0 %334  ;;  %vm605_vm3 = vcmask 834560  }
  0xdc   :  { %342 = vst.msk [vmem:[#allocation3 + $0x4] sm:$0x3] %vm337_vm0, %v340_v3  ;;  %338 = vst.msk [vmem:[#allocation2 + $0x4] sm:$0x3] %vm337_vm0, %v335_v4  ;;  %vm542_vm0 = vcmask 859136  }
  0xdf   :  { %v349_v7 = vpop.permute.xlu1 %348  ;;  %v344_v8 = vpop.permute.xlu0 %343 }
  0xe0   :  { %351 = vst.msk [vmem:[#allocation3 + $0x4] sm:$0x3] %vm346_vm4, %v349_v7  ;;  %347 = vst.msk [vmem:[#allocation2 + $0x4] sm:$0x3] %vm346_vm4, %v344_v8  ;;  %v674_v7 = vstv %s1454_s26  ;;  %s1472_s26 = sld [smem:[#allocation4 + $0x48]]  ;;  %vm626_vm4 = vcmask 826368  }
  0xe1   :  { %367 = vst.msk [vmem:[#allocation3 + $0x4] sm:$0xf] %vm360_vm5, %v365_v9  ;;  %361 = vst.msk [vmem:[#allocation2 + $0x4] sm:$0xf] %vm360_vm5, %v356_v11  ;;  %vm647_vm5 = vcmask 818176  }
  0xe3   :  { %v374_v12 = vpop.permute.xlu1 %373  ;;  %v369_v13 = vpop.permute.xlu0 %368 }
  0xe4   :  { %376 = vst.msk [vmem:[#allocation3 + $0x6] sm:$0x3] %vm371_vm6, %v374_v12  ;;  %372 = vst.msk [vmem:[#allocation2 + $0x6] sm:$0x3] %vm371_vm6, %v369_v13  ;;  %v695_v12 = vstv %s1456_s0  ;;  %s1474_s0 = sld [smem:[#allocation4 + $0x49]]  ;;  %vm669_vm6 = vcmask 687104  }
  0xe8   :  { %v1810_v16 = vld [vmem:[#allocation3] sm:$0x3f]  ;;  %v1812_v18 = vld [vmem:[#allocation2] sm:$0x3f] }
  0xe9   :  { %v400_v19 = vmul.f32 %v399_v14, %v1810_v16  ;;  %v390_v20 = vmul.f32 %v389_v15, %v1812_v18  ;;  %v421_v23 = vmul.f32 %v420_v21, %v1810_v16  ;;  %v411_v24 = vmul.f32 %v410_v22, %v1812_v18 }
  0xea   :  { %v442_v27 = vmul.f32 %v441_v25, %v1810_v16  ;;  %v432_v28 = vmul.f32 %v431_v26, %v1812_v18  ;;  %v463_v17 = vmul.f32 %v462_v29, %v1810_v16  ;;  %v453_v31 = vmul.f32 %v452_v30, %v1812_v18 }
  0xeb   :  { %402 = vrot.lane.b32.xlu1 %v400_v19, %s1676_s27  ;;  %392 = vrot.lane.b32.xlu0 %v390_v20, %s1676_s27  ;;  %v484_v34 = vmul.f32 %v483_v32, %v1810_v16  ;;  %v474_v35 = vmul.f32 %v473_v33, %v1812_v18  ;;  %v505_v38 = vmul.f32 %v504_v36, %v1810_v16  ;;  %s1453_s27 = sld [smem:[#allocation4 + $0xe]]  ;;  %v1848_v5 = vld [vmem:[#allocation3] sm:$0xff]  ;;  %v1850_v6 = vld [vmem:[#allocation2] sm:$0xff]  ;;  %v716_v19 = vstv %s1458_s3  ;;  %s1476_s3 = sld [smem:[#allocation4 + $0x4a]] }
  0xec   :  { %v495_v39 = vmul.f32 %v494_v37, %v1812_v18  ;;  %v526_v42 = vmul.f32 %v525_v40, %v1810_v16  ;;  %v516_v43 = vmul.f32 %v515_v41, %v1812_v18  ;;  %v547_v46 = vmul.f32 %v546_v44, %v1810_v16 }
  0xed   :  { %v537_v47 = vmul.f32 %v536_v45, %v1812_v18  ;;  %v568_v50 = vmul.f32 %v567_v48, %v1810_v16  ;;  %v558_v51 = vmul.f32 %v557_v49, %v1812_v18  ;;  %v589_v54 = vmul.f32 %v588_v52, %v1810_v16 }
  0xee   :  { %v579_v55 = vmul.f32 %v578_v53, %v1812_v18  ;;  %v610_v58 = vmul.f32 %v609_v56, %v1810_v16  ;;  %v600_v59 = vmul.f32 %v599_v57, %v1812_v18  ;;  %v631_v62 = vmul.f32 %v630_v60, %v1810_v16 }
  0xef   :  { %423 = vrot.lane.b32.xlu1 %v421_v23, %s1677_s29  ;;  %413 = vrot.lane.b32.xlu0 %v411_v24, %s1677_s29  ;;  %v621_v63 = vmul.f32 %v620_v61, %v1812_v18  ;;  %s1455_s29 = sld [smem:[#allocation4 + $0xf]]  ;;  %v652_v3 = vmul.f32 %v651_v0, %v1810_v16  ;;  %v642_v4 = vmul.f32 %v641_v2, %v1812_v18  ;;  %v736_v23 = vstv %s1460_s6  ;;  %s1478_s6 = sld [smem:[#allocation4 + $0x4b]] }
  0xf0   :  { %v675_v9 = vmul.f32 %v674_v7, %v1848_v5  ;;  %v696_v14 = vmul.f32 %v695_v12, %v1848_v5  ;;  %v717_v21 = vmul.f32 %v716_v19, %v1848_v5  ;;  %v727_v24 = vstv %s1459_s8  ;;  %s1477_s8 = sld [smem:[#allocation4 + $0x1a]] }
  0xf1   :  { %v663_v8 = vstv %s1453_s27  ;;  %v737_v25 = vmul.f32 %v736_v23, %v1848_v5  ;;  %v728_v26 = vmul.f32 %v727_v24, %v1850_v6  ;;  %s1471_s27 = sld [smem:[#allocation4 + $0x17]] }
  0xf2   :  { %v664_v11 = vmul.f32 %v663_v8, %v1850_v6 }
  0xf3   :  { %444 = vrot.lane.b32.xlu1 %v442_v27, %s1678_s1  ;;  %434 = vrot.lane.b32.xlu0 %v432_v28, %s1678_s1  ;;  %s1457_s1 = sld [smem:[#allocation4 + $0x10]]  ;;  %v757_v27 = vstv %s1462_s11  ;;  %v747_v28 = vstv %s1461_s13  ;;  %s1480_s11 = sld [smem:[#allocation4 + $0x4c]] }
  0xf4   :  { %v758_v29 = vmul.f32 %v757_v27, %v1848_v5  ;;  %v748_v30 = vmul.f32 %v747_v28, %v1850_v6  ;;  %s1479_s13 = sld [smem:[#allocation4 + $0x1b]] }
  0xf5   :  { %v685_v13 = vstv %s1455_s29  ;;  %s1473_s29 = sld [smem:[#allocation4 + $0x18]] }
  0xf6   :  { %v686_v15 = vmul.f32 %v685_v13, %v1850_v6 }
  0xf7   :  { %465 = vrot.lane.b32.xlu1 %v463_v17, %s1679_s7  ;;  %455 = vrot.lane.b32.xlu0 %v453_v31, %s1679_s7  ;;  %v778_v17 = vstv %s1464_s17  ;;  %s1482_s17 = sld [smem:[#allocation4 + $0x4d]] }
  0xf8   :  { %v779_v32 = vmul.f32 %v778_v17, %v1848_v5 }
  0xf9   :  { %v706_v20 = vstv %s1457_s1  ;;  %s1475_s1 = sld [smem:[#allocation4 + $0x19]] }
  0xfa   :  { %v707_v22 = vmul.f32 %v706_v20, %v1850_v6 }
  0xfb   :  { %486 = vrot.lane.b32.xlu1 %v484_v34, %s1669_s12  ;;  %476 = vrot.lane.b32.xlu0 %v474_v35, %s1669_s12  ;;  %v799_v34 = vstv %s1466_s20  ;;  %v789_v35 = vstv %s1465_s21  ;;  %s1484_s20 = sld [smem:[#allocation4 + $0x4e]]  ;;  %s1483_s21 = sld [smem:[#allocation4 + $0x1d]] }
  0xfc   :  { %v800_v36 = vmul.f32 %v799_v34, %v1848_v5  ;;  %v790_v37 = vmul.f32 %v789_v35, %v1850_v6 }
  0xff   :  { %507 = vrot.lane.b32.xlu1 %v505_v38, %s1680_s14  ;;  %497 = vrot.lane.b32.xlu0 %v495_v39, %s1680_s14  ;;  %v820_v38 = vstv %s1468_s22  ;;  %s1698_s22 = smov 57  }
 0x100   :  { %v821_v40 = vmul.f32 %v820_v38, %v1848_v5 }
 0x103   :  { %528 = vrot.lane.b32.xlu1 %v526_v42, %s1681_s18  ;;  %518 = vrot.lane.b32.xlu0 %v516_v43, %s1681_s18  ;;  %s1463_s18 = sld [smem:[#allocation4 + $0x13]]  ;;  %v841_v42 = vstv %s1470_s25  ;;  %s1699_s25 = smov 56  }
 0x104   :  { %v842_v44 = vmul.f32 %v841_v42, %v1848_v5 }
 0x107   :  { %549 = vrot.lane.b32.xlu1 %v547_v46, %s1667_s10  ;;  %539 = vrot.lane.b32.xlu0 %v537_v47, %s1667_s10  ;;  %s1683_s10 = smov 103   ;;  %v862_v46 = vstv %s1472_s26  ;;  %v852_v47 = vstv %s1471_s27  ;;  %s1888_s26 = sld [smem:[#allocation4 + $0x50]] }
 0x108   :  { %v863_v48 = vmul.f32 %v862_v46, %v1848_v5  ;;  %v853_v49 = vmul.f32 %v852_v47, %v1850_v6  ;;  %s1890_s27 = sld [smem:[#allocation4 + $0x1f]] }
 0x109   :  { %v768_v31 = vstv %s1463_s18  ;;  %s1481_s18 = sld [smem:[#allocation4 + $0x1c]] }
 0x10a   :  { %v769_v33 = vmul.f32 %v768_v31, %v1850_v6 }
 0x10b   :  { %570 = vrot.lane.b32.xlu1 %v568_v50, %s1682_s23  ;;  %560 = vrot.lane.b32.xlu0 %v558_v51, %s1682_s23  ;;  %s1467_s23 = sld [smem:[#allocation4 + $0x15]]  ;;  %v883_v50 = vstv %s1474_s0  ;;  %v873_v51 = vstv %s1473_s29  ;;  %s1894_s0 = sld [smem:[#allocation4 + $0x51]] }
 0x10c   :  { %v884_v52 = vmul.f32 %v883_v50, %v1848_v5  ;;  %v874_v53 = vmul.f32 %v873_v51, %v1850_v6  ;;  %s1896_s29 = sld [smem:[#allocation4 + $0x20]] }
 0x10d   :  { %v1030_v27 = vstv %s1888_s26  ;;  %s1708_s26 = smov 17  }
 0x10e   :  { %v1020_v28 = vstv %s1890_s27  ;;  %s1972_s27 = sld [smem:[#allocation4 + $0x59]] }
 0x10f   :  { %591 = vrot.lane.b32.xlu1 %v589_v54, %s1683_s10  ;;  %581 = vrot.lane.b32.xlu0 %v579_v55, %s1683_s10  ;;  %s1469_s10 = sld [smem:[#allocation4 + $0x16]]  ;;  %v904_v54 = vstv %s1476_s3  ;;  %v894_v55 = vstv %s1475_s1  ;;  %s1904_s3 = sld [smem:[#allocation4 + $0x52]] }
 0x110   :  { %v905_v56 = vmul.f32 %v904_v54, %v1848_v5  ;;  %v895_v57 = vmul.f32 %v894_v55, %v1850_v6  ;;  %s1906_s1 = sld [smem:[#allocation4 + $0x21]] }
 0x111   :  { %v810_v39 = vstv %s1467_s23  ;;  %s1486_s23 = sld [smem:[#allocation4 + $0x4f]] }
 0x112   :  { %v811_v41 = vmul.f32 %v810_v39, %v1850_v6  ;;  %v1041_v39 = vstv %s1896_s29  ;;  %s1983_s29 = sld [smem:[#allocation4 + $0x5a]] }
 0x113   :  { %612 = vrot.lane.b32.xlu1 %v610_v58, %s1684_s28  ;;  %602 = vrot.lane.b32.xlu0 %v600_v59, %s1684_s28  ;;  %s1692_s28 = smov 78   ;;  %v925_v58 = vstv %s1478_s6  ;;  %v915_v59 = vstv %s1477_s8  ;;  %s1916_s6 = sld [smem:[#allocation4 + $0x53]]  ;;  %v1042_v47 = vmul.f32 %v1041_v39, %v1850_v6 }
 0x114   :  { %v926_v60 = vmul.f32 %v925_v58, %v1848_v5  ;;  %v916_v61 = vmul.f32 %v915_v59, %v1850_v6  ;;  %s1918_s8 = sld [smem:[#allocation4 + $0x22]] }
 0x115   :  { %v831_v43 = vstv %s1469_s10  ;;  %s1882_s10 = sld [smem:[#allocation4 + $0x31]]  ;;  %v1072_v50 = vstv %s1904_s3  ;;  %s1710_s3 = smov 15  }
 0x116   :  { %v832_v45 = vmul.f32 %v831_v43, %v1850_v6  ;;  %v1062_v51 = vstv %s1906_s1  ;;  %v1073_v58 = vmul.f32 %v1072_v50, %v1848_v5  ;;  %s1994_s1 = sld [smem:[#allocation4 + $0x5b]] }
 0x117   :  { %633 = vrot.lane.b32.xlu1 %v631_v62, %s1685_s30  ;;  %623 = vrot.lane.b32.xlu0 %v621_v63, %s1685_s30  ;;  %s1693_s30 = smov 62   ;;  %v946_v62 = vstv %s1480_s11  ;;  %v936_v63 = vstv %s1479_s13  ;;  %s1926_s11 = sld [smem:[#allocation4 + $0x54]]  ;;  %v1063_v59 = vmul.f32 %v1062_v51, %v1850_v6 }
 0x118   :  { %v947_v0 = vmul.f32 %v946_v62, %v1848_v5  ;;  %v937_v2 = vmul.f32 %v936_v63, %v1850_v6  ;;  %s1928_s13 = sld [smem:[#allocation4 + $0x23]] }
 0x119   :  { %v1093_v62 = vstv %s1916_s6  ;;  %s1711_s6 = smov 14  }
 0x11a   :  { %v1083_v63 = vstv %s1918_s8  ;;  %s2002_s8 = sld [smem:[#allocation4 + $0x5c]] }
 0x11b   :  { %654 = vrot.lane.b32.xlu1 %v652_v3, %s1686_s5  ;;  %644 = vrot.lane.b32.xlu0 %v642_v4, %s1686_s5  ;;  %s1694_s5 = smov 61   ;;  %v967_v3 = vstv %s1482_s17  ;;  %v957_v4 = vstv %s1481_s18  ;;  %s1936_s17 = sld [smem:[#allocation4 + $0x55]] }
 0x11c   :  { %v968_v7 = vmul.f32 %v967_v3, %v1848_v5  ;;  %v958_v8 = vmul.f32 %v957_v4, %v1850_v6  ;;  %v384_v19 = vstv %s1882_s10  ;;  %s1938_s18 = sld [smem:[#allocation4 + $0x24]]  ;;  %s1962_s10 = sld [smem:[#allocation4 + $0x58]] }
 0x11f   :  { %677 = vrot.lane.b32.xlu1 %v675_v9, %s1687_s9  ;;  %666 = vrot.lane.b32.xlu0 %v664_v11, %s1687_s9  ;;  %s1695_s9 = smov 60   ;;  %v988_v9 = vstv %s1484_s20  ;;  %v978_v11 = vstv %s1483_s21  ;;  %s1946_s20 = sld [smem:[#allocation4 + $0x56]] }
 0x120   :  { %v989_v12 = vmul.f32 %v988_v9, %v1848_v5  ;;  %v979_v13 = vmul.f32 %v978_v11, %v1850_v6  ;;  %v1094_v9 = vmul.f32 %v1093_v62, %v1848_v5  ;;  %v1084_v11 = vmul.f32 %v1083_v63, %v1850_v6  ;;  %s1948_s21 = sld [smem:[#allocation4 + $0x25]] }
 0x123   :  { %698 = vrot.lane.b32.xlu1 %v696_v14, %s1688_s15  ;;  %688 = vrot.lane.b32.xlu0 %v686_v15, %s1688_s15  ;;  %s1696_s15 = smov 59   ;;  %v1009_v14 = vstv %s1486_s23  ;;  %s1956_s23 = sld [smem:[#allocation4 + $0x57]] }
 0x124   :  { %v1010_v23 = vmul.f32 %v1009_v14, %v1848_v5  ;;  %v1114_v14 = vstv %s1926_s11  ;;  %s2012_s11 = sld [smem:[#allocation4 + $0x5d]] }
 0x126   :  { %v1146_v39 = vstv %s1948_s21  ;;  %s1713_s21 = smov 121  }
 0x127   :  { %719 = vrot.lane.b32.xlu1 %v717_v21, %s1689_s19  ;;  %709 = vrot.lane.b32.xlu0 %v707_v22, %s1689_s19  ;;  %s1697_s19 = smov 58  }
 0x129   :  { %v1177_v50 = vstv %s1956_s23  ;;  %s1715_s23 = smov 119  }
 0x12b   :  { %739 = vrot.lane.b32.xlu1 %v737_v25, %s1661_s4  ;;  %730 = vrot.lane.b32.xlu0 %v728_v26, %s1661_s4  ;;  %s1691_s4 = smov 79  }
 0x12f   :  { %760 = vrot.lane.b32.xlu1 %v758_v29, %s1690_s24  ;;  %750 = vrot.lane.b32.xlu0 %v748_v30, %s1690_s24  ;;  %s1485_s24 = sld [smem:[#allocation4 + $0x1e]]  ;;  %v385_v29 = vmul.f32 %v384_v19, %v1810_v16  ;;  %v1021_v16 = vmul.f32 %v1020_v28, %v1850_v6 }
 0x133   :  { %781 = vrot.lane.b32.xlu1 %v779_v32, %s1691_s4  ;;  %771 = vrot.lane.b32.xlu0 %v769_v33, %s1691_s4  ;;  %s1884_s4 = sld [smem:[#allocation4]] }
 0x135   :  { %v999_v15 = vstv %s1485_s24  ;;  %s1958_s24 = sld [smem:[#allocation4 + $0x26]] }
 0x136   :  { %v1000_v24 = vmul.f32 %v999_v15, %v1850_v6  ;;  %v1104_v15 = vstv %s1928_s13  ;;  %s1712_s13 = smov 12  }
 0x137   :  { %802 = vrot.lane.b32.xlu1 %v800_v36, %s1692_s28  ;;  %792 = vrot.lane.b32.xlu0 %v790_v37, %s1692_s28  ;;  %s1700_s28 = smov 40   ;;  %v1031_v36 = vmul.f32 %v1030_v27, %v1848_v5 }
 0x139   :  { %v380_v20 = vstv %s1884_s4  ;;  %s1968_s4 = sld [smem:[#allocation4 + $0x27]] }
 0x13a   :  { %v381_v30 = vmul.f32 %v380_v20, %v1812_v18  ;;  %v1051_v18 = vstv %s1894_s0  ;;  %s1709_s0 = smov 16  }
 0x13b   :  { %823 = vrot.lane.b32.xlu1 %v821_v40, %s1693_s30  ;;  %813 = vrot.lane.b32.xlu0 %v811_v41, %s1693_s30  ;;  %s1701_s30 = smov 39   ;;  %v1052_v46 = vmul.f32 %v1051_v18, %v1848_v5  ;;  %v1156_v18 = vstv %s1946_s20  ;;  %v1167_v51 = vstv %s1958_s24  ;;  %s2056_s20 = sld [smem:[#allocation4 + $0x61]] }
 0x13c   :  { %s1716_s24 = smov 118  }
 0x13f   :  { %844 = vrot.lane.b32.xlu1 %v842_v44, %s1694_s5  ;;  %834 = vrot.lane.b32.xlu0 %v832_v45, %s1694_s5  ;;  %s1702_s5 = smov 38   ;;  %v1188_v63 = vstv %s1968_s4 }
 0x143   :  { %865 = vrot.lane.b32.xlu1 %v863_v48, %s1695_s9  ;;  %855 = vrot.lane.b32.xlu0 %v853_v49, %s1695_s9  ;;  %s1703_s9 = smov 37  }
 0x147   :  { %886 = vrot.lane.b32.xlu1 %v884_v52, %s1696_s15  ;;  %876 = vrot.lane.b32.xlu0 %v874_v53, %s1696_s15  ;;  %s1704_s15 = smov 36  }
 0x14b   :  { %907 = vrot.lane.b32.xlu1 %v905_v56, %s1697_s19  ;;  %897 = vrot.lane.b32.xlu0 %v895_v57, %s1697_s19  ;;  %s1705_s19 = smov 35  }
 0x14f   :  { %928 = vrot.lane.b32.xlu1 %v926_v60, %s1698_s22  ;;  %918 = vrot.lane.b32.xlu0 %v916_v61, %s1698_s22  ;;  %s1706_s22 = smov 34  }
 0x153   :  { %949 = vrot.lane.b32.xlu1 %v947_v0, %s1699_s25  ;;  %939 = vrot.lane.b32.xlu0 %v937_v2, %s1699_s25  ;;  %s1707_s25 = smov 18  }
 0x157   :  { %970 = vrot.lane.b32.xlu1 %v968_v7, %s1700_s28  ;;  %960 = vrot.lane.b32.xlu0 %v958_v8, %s1700_s28  ;;  %s1978_s28 = sld [smem:[#allocation4 + $0x28]] }
 0x15b   :  { %991 = vrot.lane.b32.xlu1 %v989_v12, %s1701_s30  ;;  %981 = vrot.lane.b32.xlu0 %v979_v13, %s1701_s30  ;;  %s1988_s30 = sld [smem:[#allocation4 + $0x29]] }
 0x15d   :  { %v403_v21 = vpop.permute.xlu1 %402  ;;  %v393_v22 = vpop.permute.xlu0 %392 }
 0x15e   :  { %v404_v25 = vrot.slane %v403_v21, 2  ;;  %v394_v26 = vrot.slane %v393_v22, 2 }
 0x15f   :  { %1012 = vrot.lane.b32.xlu1 %v1010_v23, %s1702_s5  ;;  %1002 = vrot.lane.b32.xlu0 %v1000_v24, %s1702_s5  ;;  %s1998_s5 = sld [smem:[#allocation4 + $0x2a]] }
 0x160   :  { %v405_v17 = vsel %vm395_vm8, %v403_v21, %v404_v25  ;;  %v396_v31 = vsel %vm395_vm8, %v393_v22, %v394_v26  ;;  %v1115_v25 = vmul.f32 %v1114_v14, %v1848_v5  ;;  %v1105_v26 = vmul.f32 %v1104_v15, %v1850_v6 }
 0x161   :  { %v407_v32 = vadd.f32 %v405_v17, %v385_v29  ;;  %v398_v33 = vadd.f32 %v396_v31, %v381_v30  ;;  %v424_v34 = vpop.permute.xlu1 %423  ;;  %v414_v35 = vpop.permute.xlu0 %413  ;;  %v1135_v29 = vstv %s1936_s17  ;;  %v1125_v30 = vstv %s1938_s18  ;;  %s2028_s17 = sld [smem:[#allocation4 + $0x2d]]  ;;  %s2036_s18 = sld [smem:[#allocation4 + $0x5f]] }
 0x162   :  { %v425_v37 = vrot.slane %v424_v34, 2  ;;  %v415_v38 = vrot.slane %v414_v35, 2  ;;  %v1209_v15 = vstv %s1978_s28  ;;  %vm691_vm8 = vcmask 678912  }
 0x163   :  { %1033 = vrot.lane.b32.xlu1 %v1031_v36, %s1703_s9  ;;  %1023 = vrot.lane.b32.xlu0 %v1021_v16, %s1703_s9  ;;  %v1136_v36 = vmul.f32 %v1135_v29, %v1848_v5  ;;  %v1126_v16 = vmul.f32 %v1125_v30, %v1850_v6  ;;  %v1230_v30 = vstv %s1988_s30  ;;  %s2006_s9 = sld [smem:[#allocation4 + $0x2b]] }
 0x164   :  { %v426_v40 = vsel %vm416_vm9, %v424_v34, %v425_v37  ;;  %v417_v41 = vsel %vm416_vm9, %v414_v35, %v415_v38  ;;  %vm712_vm9 = vcmask 670720  }
 0x165   :  { %v428_v42 = vadd.f32 %v426_v40, %v407_v32  ;;  %v419_v43 = vadd.f32 %v417_v41, %v398_v33  ;;  %v445_v44 = vpop.permute.xlu1 %444  ;;  %v435_v45 = vpop.permute.xlu0 %434 }
 0x166   :  { %v446_v48 = vrot.slane %v445_v44, 2  ;;  %v436_v49 = vrot.slane %v435_v45, 2 }
 0x167   :  { %1054 = vrot.lane.b32.xlu1 %v1052_v46, %s1704_s15  ;;  %1044 = vrot.lane.b32.xlu0 %v1042_v47, %s1704_s15  ;;  %v1157_v46 = vmul.f32 %v1156_v18, %v1848_v5  ;;  %v1147_v47 = vmul.f32 %v1146_v39, %v1850_v6  ;;  %s2024_s15 = sld [smem:[#allocation4 + $0x5e]] }
 0x168   :  { %v447_v52 = vsel %vm437_vm10, %v445_v44, %v446_v48  ;;  %v438_v53 = vsel %vm437_vm10, %v435_v45, %v436_v49  ;;  %vm774_vm10 = vcmask 646144  }
 0x169   :  { %v449_v54 = vadd.f32 %v447_v52, %v428_v42  ;;  %v440_v55 = vadd.f32 %v438_v53, %v419_v43  ;;  %v466_v56 = vpop.permute.xlu1 %465  ;;  %v456_v57 = vpop.permute.xlu0 %455 }
 0x16a   :  { %v467_v60 = vrot.slane %v466_v56, 2  ;;  %v457_v61 = vrot.slane %v456_v57, 2 }
 0x16b   :  { %1075 = vrot.lane.b32.xlu1 %v1073_v58, %s1705_s19  ;;  %1065 = vrot.lane.b32.xlu0 %v1063_v59, %s1705_s19  ;;  %v1178_v59 = vmul.f32 %v1177_v50, %v1848_v5  ;;  %s2046_s19 = sld [smem:[#allocation4 + $0x60]] }
 0x16c   :  { %v468_v0 = vsel %vm458_vm11, %v466_v56, %v467_v60  ;;  %v459_v2 = vsel %vm458_vm11, %v456_v57, %v457_v61  ;;  %v1168_v60 = vmul.f32 %v1167_v51, %v1850_v6  ;;  %v1273_v51 = vstv %s2006_s9 }
 0x16d   :  { %v470_v3 = vadd.f32 %v468_v0, %v449_v54  ;;  %v461_v4 = vadd.f32 %v459_v2, %v440_v55  ;;  %v487_v7 = vpop.permute.xlu1 %486  ;;  %v477_v8 = vpop.permute.xlu0 %476  ;;  %v1198_v54 = vstv %s1962_s10 }
 0x16e   :  { %v488_v12 = vrot.slane %v487_v7, 2  ;;  %v478_v13 = vrot.slane %v477_v8, 2 }
 0x16f   :  { %1096 = vrot.lane.b32.xlu1 %v1094_v9, %s1706_s22  ;;  %1086 = vrot.lane.b32.xlu0 %v1084_v11, %s1706_s22  ;;  %s1714_s22 = smov 120  }
 0x170   :  { %v489_v19 = vsel %vm479_vm12, %v487_v7, %v488_v12  ;;  %v480_v20 = vsel %vm479_vm12, %v477_v8, %v478_v13  ;;  %v1189_v12 = vmul.f32 %v1188_v63, %v1850_v6 }
 0x171   :  { %v491_v21 = vadd.f32 %v489_v19, %v470_v3  ;;  %v482_v22 = vadd.f32 %v480_v20, %v461_v4  ;;  %v508_v23 = vpop.permute.xlu1 %507  ;;  %v498_v24 = vpop.permute.xlu0 %497  ;;  %v1199_v3 = vmul.f32 %v1198_v54, %v1848_v5  ;;  %v1219_v4 = vstv %s1972_s27 }
 0x172   :  { %v509_v27 = vrot.slane %v508_v23, 2  ;;  %v499_v28 = vrot.slane %v498_v24, 2 }
 0x173   :  { %1117 = vrot.lane.b32.xlu1 %v1115_v25, %s1707_s25  ;;  %1107 = vrot.lane.b32.xlu0 %v1105_v26, %s1707_s25  ;;  %s1717_s25 = smov [#allocation9]  }
 0x174   :  { %v510_v17 = vsel %vm500_vm13, %v508_v23, %v509_v27  ;;  %v501_v31 = vsel %vm500_vm13, %v498_v24, %v499_v28  ;;  %v1210_v27 = vmul.f32 %v1209_v15, %v1850_v6  ;;  %v1313_v15 = vstv %s2028_s17  ;;  %s1416_s10 = sshll.u32 %s1717_s25, 4  ;;  %s1417_s10 = int_to_ptr.vmem [resolvable:$true] %s1416_s10 }
 0x175   :  { %v512_v32 = vadd.f32 %v510_v17, %v491_v21  ;;  %v503_v33 = vadd.f32 %v501_v31, %v482_v22  ;;  %v529_v34 = vpop.permute.xlu1 %528  ;;  %v519_v35 = vpop.permute.xlu0 %518  ;;  %v1220_v21 = vmul.f32 %v1219_v4, %v1848_v5  ;;  %v1240_v22 = vstv %s1983_s29  ;;  %s1626_s4 = scalar_lea.vmem %s1417_s10, 96  ;;  %p1631_p12 = scmp.lt.s32.totalorder %s1417_s10, %s1417_s10 }
 0x176   :  { %v530_v37 = vrot.slane %v529_v34, 2  ;;  %v520_v38 = vrot.slane %v519_v35, 2  ;;  %v1323_v4 = vstv %s2024_s15  ;;  %p1627_p11 = scmp.ne.s32.totalorder %s1417_s10, %s1626_s4  ;;  %p1632_p13 = scmp.lt.s32.totalorder %s1626_s4, %s1626_s4 }
 0x177   :  { %1138 = vrot.lane.b32.xlu1 %v1136_v36, %s1708_s26  ;;  %1128 = vrot.lane.b32.xlu0 %v1126_v16, %s1708_s26 }
 0x178   :  { %v531_v40 = vsel %vm521_vm14, %v529_v34, %v530_v37  ;;  %v522_v41 = vsel %vm521_vm14, %v519_v35, %v520_v38  ;;  %v1231_v37 = vmul.f32 %v1230_v30, %v1850_v6  ;;  %v2015_v38 = vld [vmem:[#allocation3 + $0x2] sm:$0x3f]  ;;  %vm795_vm14 = vcmask 637952   ;;  %p1633_p0 = por %p1632_p13, %p1631_p12 }
 0x179   :  { %v533_v42 = vadd.f32 %v531_v40, %v512_v32  ;;  %v524_v43 = vadd.f32 %v522_v41, %v503_v33  ;;  %v550_v44 = vpop.permute.xlu1 %549  ;;  %v540_v45 = vpop.permute.xlu0 %539  ;;  %v1241_v32 = vmul.f32 %v1240_v22, %v1848_v5  ;;  %v1262_v33 = vstv %s1994_s1  ;;  %v2017_v40 = vld [vmem:[#allocation2 + $0x2] sm:$0x3f] }
 0x17a   :  { %v551_v48 = vrot.slane %v550_v44, 2  ;;  %v541_v49 = vrot.slane %v540_v45, 2  ;;  %v1252_v41 = vstv %s1998_s5  ;;  %p1634_p1 = pnand %p1633_p0, %p1627_p11 }
 0x17b   :  { %1159 = vrot.lane.b32.xlu1 %v1157_v46, %s1709_s0  ;;  %1149 = vrot.lane.b32.xlu0 %v1147_v47, %s1709_s0 }
 0x17c   :  { %v552_v52 = vsel %vm542_vm0, %v550_v44, %v551_v48  ;;  %v543_v53 = vsel %vm542_vm0, %v540_v45, %v541_v49  ;;  %v1282_v44 = vstv %s2002_s8  ;;  %v1253_v48 = vmul.f32 %v1252_v41, %v2017_v40 }
 0x17d   :  { %v554_v55 = vadd.f32 %v552_v52, %v533_v42  ;;  %v545_v56 = vadd.f32 %v543_v53, %v524_v43  ;;  %v571_v57 = vpop.permute.xlu1 %570  ;;  %v561_v58 = vpop.permute.xlu0 %560  ;;  %v1263_v43 = vmul.f32 %v1262_v33, %v2015_v38  ;;  %v1283_v54 = vmul.f32 %v1282_v44, %v2015_v38 }
 0x17e   :  { %v572_v61 = vrot.slane %v571_v57, 2  ;;  %v562_v62 = vrot.slane %v561_v58, 2  ;;  %vm816_vm0 = vcmask 506880  }
 0x17f   :  { %1180 = vrot.lane.b32.xlu1 %v1178_v59, %s1710_s3  ;;  %1170 = vrot.lane.b32.xlu0 %v1168_v60, %s1710_s3  ;;  %v1274_v60 = vmul.f32 %v1273_v51, %v2017_v40 }
 0x180   :  { %v573_v0 = vsel %vm563_vm1, %v571_v57, %v572_v61  ;;  %v564_v2 = vsel %vm563_vm1, %v561_v58, %v562_v62  ;;  %vm837_vm1 = vcmask 498688  }
 0x181   :  { %v575_v7 = vadd.f32 %v573_v0, %v554_v55  ;;  %v566_v8 = vadd.f32 %v564_v2, %v545_v56  ;;  %v592_v9 = vpop.permute.xlu1 %591  ;;  %v582_v11 = vpop.permute.xlu0 %581  ;;  %v1302_v55 = vstv %s2012_s11 }
 0x182   :  { %v593_v13 = vrot.slane %v592_v9, 2  ;;  %v583_v14 = vrot.slane %v582_v11, 2 }
 0x183   :  { %1201 = vrot.lane.b32.xlu1 %v1199_v3, %s1711_s6  ;;  %1191 = vrot.lane.b32.xlu0 %v1189_v12, %s1711_s6  ;;  %v1303_v3 = vmul.f32 %v1302_v55, %v2015_v38 }
 0x184   :  { %v594_v19 = vsel %vm584_vm2, %v592_v9, %v593_v13  ;;  %v585_v20 = vsel %vm584_vm2, %v582_v11, %v583_v14  ;;  %vm858_vm2 = vcmask 490496  }
 0x185   :  { %v596_v23 = vadd.f32 %v594_v19, %v575_v7  ;;  %v587_v24 = vadd.f32 %v585_v20, %v566_v8  ;;  %v613_v25 = vpop.permute.xlu1 %612  ;;  %v603_v26 = vpop.permute.xlu0 %602 }
 0x186   :  { %v614_v28 = vrot.slane %v613_v25, 2  ;;  %v604_v29 = vrot.slane %v603_v26, 2 }
 0x187   :  { %1222 = vrot.lane.b32.xlu1 %v1220_v21, %s1673_s16  ;;  %1212 = vrot.lane.b32.xlu0 %v1210_v27, %s1673_s16  ;;  %s2020_s16 = sld [smem:[#allocation4 + $0x2c]]  ;;  %v1324_v21 = vmul.f32 %v1323_v4, %v2015_v38 }
 0x188   :  { %v615_v17 = vsel %vm605_vm3, %v613_v25, %v614_v28  ;;  %v606_v31 = vsel %vm605_vm3, %v603_v26, %v604_v29  ;;  %v1314_v26 = vmul.f32 %v1313_v15, %v2017_v40  ;;  %v1344_v29 = vstv %s2036_s18 }
 0x189   :  { %v617_v34 = vadd.f32 %v615_v17, %v596_v23  ;;  %v608_v35 = vadd.f32 %v606_v31, %v587_v24  ;;  %v634_v36 = vpop.permute.xlu1 %633  ;;  %v624_v16 = vpop.permute.xlu0 %623  ;;  %vm879_vm3 = vcmask 482304  }
 0x18a   :  { %v635_v18 = vrot.slane %v634_v36, 2  ;;  %v625_v39 = vrot.slane %v624_v16, 2 }
 0x18b   :  { %1243 = vrot.lane.b32.xlu1 %v1241_v32, %s1712_s13  ;;  %1233 = vrot.lane.b32.xlu0 %v1231_v37, %s1712_s13 }
 0x18c   :  { %v636_v5 = vsel %vm626_vm4, %v634_v36, %v635_v18  ;;  %v627_v42 = vsel %vm626_vm4, %v624_v16, %v625_v39  ;;  %v1345_v36 = vmul.f32 %v1344_v29, %v2015_v38  ;;  %v1365_v39 = vstv %s2046_s19 }
 0x18d   :  { %v638_v6 = vadd.f32 %v636_v5, %v617_v34  ;;  %v629_v45 = vadd.f32 %v627_v42, %v608_v35  ;;  %v655_v46 = vpop.permute.xlu1 %654  ;;  %v645_v47 = vpop.permute.xlu0 %644  ;;  %v1293_v63 = vstv %s2020_s16  ;;  %vm900_vm4 = vcmask 474112  }
 0x18e   :  { %v656_v49 = vrot.slane %v655_v46, 2  ;;  %v646_v50 = vrot.slane %v645_v47, 2  ;;  %v1294_v12 = vmul.f32 %v1293_v63, %v2017_v40 }
 0x18f   :  { %1265 = vrot.lane.b32.xlu1 %v1263_v43, %s1679_s7  ;;  %1255 = vrot.lane.b32.xlu0 %v1253_v48, %s1679_s7  ;;  %s2038_s7 = sld [smem:[#allocation4 + $0x2e]]  ;;  %v1386_v48 = vstv %s2056_s20 }
 0x190   :  { %v657_v52 = vsel %vm647_vm5, %v655_v46, %v656_v49  ;;  %v648_v53 = vsel %vm647_vm5, %v645_v47, %v646_v50  ;;  %v1366_v46 = vmul.f32 %v1365_v39, %v2015_v38  ;;  %vm921_vm5 = vcmask 465920  }
 0x191   :  { %v659_v56 = vadd.f32 %v657_v52, %v638_v6  ;;  %v650_v57 = vadd.f32 %v648_v53, %v629_v45  ;;  %v678_v58 = vpop.permute.xlu1 %677  ;;  %v667_v59 = vpop.permute.xlu0 %666  ;;  %v1387_v52 = vmul.f32 %v1386_v48, %v2015_v38 }
 0x192   :  { %v679_v61 = vrot.slane %v678_v58, 2  ;;  %v668_v62 = vrot.slane %v667_v59, 2 }
 0x193   :  { %1285 = vrot.lane.b32.xlu1 %v1283_v54, %s1669_s12  ;;  %1276 = vrot.lane.b32.xlu0 %v1274_v60, %s1669_s12  ;;  %s2048_s12 = sld [smem:[#allocation4 + $0x2f]] }
 0x194   :  { %v680_v0 = vsel %vm669_vm6, %v678_v58, %v679_v61  ;;  %v670_v2 = vsel %vm669_vm6, %v667_v59, %v668_v62  ;;  %vm942_vm6 = vcmask 457728  }
 0x195   :  { %v682_v7 = vadd.f32 %v680_v0, %v659_v56  ;;  %v672_v8 = vadd.f32 %v670_v2, %v650_v57  ;;  %v699_v9 = vpop.permute.xlu1 %698  ;;  %v689_v11 = vpop.permute.xlu0 %688  ;;  %v1334_v30 = vstv %s2038_s7 }
 0x196   :  { %v700_v13 = vrot.slane %v699_v9, 2  ;;  %v690_v14 = vrot.slane %v689_v11, 2  ;;  %v1335_v16 = vmul.f32 %v1334_v30, %v2017_v40 }
 0x197   :  { %1305 = vrot.lane.b32.xlu1 %v1303_v3, %s1680_s14  ;;  %1296 = vrot.lane.b32.xlu0 %v1294_v12, %s1680_s14  ;;  %s2058_s14 = sld [smem:[#allocation4 + $0x30]] }
 0x198   :  { %v701_v19 = vsel %vm691_vm8, %v699_v9, %v700_v13  ;;  %v692_v20 = vsel %vm691_vm8, %v689_v11, %v690_v14  ;;  %vm963_vm8 = vcmask 326656  }
 0x199   :  { %v703_v22 = vadd.f32 %v701_v19, %v682_v7  ;;  %v694_v23 = vadd.f32 %v692_v20, %v672_v8  ;;  %v720_v24 = vpop.permute.xlu1 %719  ;;  %v710_v25 = vpop.permute.xlu0 %709  ;;  %v1355_v41 = vstv %s2048_s12 }
 0x19a   :  { %v721_v27 = vrot.slane %v720_v24, 2  ;;  %v711_v28 = vrot.slane %v710_v25, 2  ;;  %v1356_v47 = vmul.f32 %v1355_v41, %v2017_v40 }
 0x19b   :  { %1326 = vrot.lane.b32.xlu1 %v1324_v21, %s1713_s21  ;;  %1316 = vrot.lane.b32.xlu0 %v1314_v26, %s1713_s21 }
 0x19c   :  { %v722_v17 = vsel %vm712_vm9, %v720_v24, %v721_v27  ;;  %v713_v31 = vsel %vm712_vm9, %v710_v25, %v711_v28  ;;  %vm984_vm9 = vcmask 318464  }
 0x19d   :  { %v724_v32 = vadd.f32 %v722_v17, %v703_v22  ;;  %v715_v33 = vadd.f32 %v713_v31, %v694_v23  ;;  %v740_v34 = vpop.permute.xlu1 %739  ;;  %v731_v35 = vpop.permute.xlu0 %730  ;;  %v1376_v49 = vstv %s2058_s14 }
 0x19e   :  { %v741_v37 = vrot.slane %v740_v34, 2  ;;  %v732_v18 = vrot.slane %v731_v35, 2  ;;  %v1377_v53 = vmul.f32 %v1376_v49, %v2017_v40 }
 0x19f   :  { %1347 = vrot.lane.b32.xlu1 %v1345_v36, %s1714_s22  ;;  %1337 = vrot.lane.b32.xlu0 %v1335_v16, %s1714_s22 }
 0x1a0   :  { %v742_v5 = vsel %vm187_vm15, %v740_v34, %v741_v37  ;;  %v733_v42 = vsel %vm187_vm15, %v731_v35, %v732_v18  ;;  %vm753_vm15 = vcmask 654336  }
 0x1a1   :  { %v744_v43 = vadd.f32 %v742_v5, %v724_v32  ;;  %v735_v44 = vadd.f32 %v733_v42, %v715_v33  ;;  %v761_v6 = vpop.permute.xlu1 %760  ;;  %v751_v45 = vpop.permute.xlu0 %750 }
 0x1a2   :  { %v762_v21 = vrot.slane %v761_v6, 2  ;;  %v752_v22 = vrot.slane %v751_v45, 2 }
 0x1a3   :  { %1368 = vrot.lane.b32.xlu1 %v1366_v46, %s1715_s23  ;;  %1358 = vrot.lane.b32.xlu0 %v1356_v47, %s1715_s23 }
 0x1a4   :  { %v763_v27 = vsel %vm753_vm15, %v761_v6, %v762_v21  ;;  %v754_v28 = vsel %vm753_vm15, %v751_v45, %v752_v22  ;;  %vm1005_vm15 = vcmask 310272  }
 0x1a5   :  { %v782_v50 = vpop.permute.xlu1 %781  ;;  %v772_v51 = vpop.permute.xlu0 %771  ;;  %v765_v34 = vadd.f32 %v763_v27, %v744_v43  ;;  %v756_v35 = vadd.f32 %v754_v28, %v735_v44 }
 0x1a6   :  { %v783_v23 = vrot.slane %v782_v50, 2  ;;  %v773_v24 = vrot.slane %v772_v51, 2 }
 0x1a7   :  { %1389 = vrot.lane.b32.xlu1 %v1387_v52, %s1716_s24  ;;  %1379 = vrot.lane.b32.xlu0 %v1377_v53, %s1716_s24 }
 0x1a8   :  { %v784_v17 = vsel %vm774_vm10, %v782_v50, %v783_v23  ;;  %v775_v31 = vsel %vm774_vm10, %v772_v51, %v773_v24  ;;  %vm1026_vm10 = vcmask 302080  }
 0x1a9   :  { %v803_v54 = vpop.permute.xlu1 %802  ;;  %v793_v55 = vpop.permute.xlu0 %792  ;;  %v786_v5 = vadd.f32 %v784_v17, %v765_v34  ;;  %v777_v42 = vadd.f32 %v775_v31, %v756_v35 }
 0x1aa   :  { %v804_v29 = vrot.slane %v803_v54, 2  ;;  %v794_v30 = vrot.slane %v793_v55, 2 }
 0x1ac   :  { %v805_v37 = vsel %vm795_vm14, %v803_v54, %v804_v29  ;;  %v796_v18 = vsel %vm795_vm14, %v793_v55, %v794_v30  ;;  %vm1047_vm14 = vcmask 293888  }
 0x1ad   :  { %v824_v56 = vpop.permute.xlu1 %823  ;;  %v814_v57 = vpop.permute.xlu0 %813  ;;  %v807_v43 = vadd.f32 %v805_v37, %v786_v5  ;;  %v798_v44 = vadd.f32 %v796_v18, %v777_v42 }
 0x1ae   :  { %v825_v32 = vrot.slane %v824_v56, 2  ;;  %v815_v33 = vrot.slane %v814_v57, 2 }
 0x1b0   :  { %v826_v6 = vsel %vm816_vm0, %v824_v56, %v825_v32  ;;  %v817_v45 = vsel %vm816_vm0, %v814_v57, %v815_v33  ;;  %vm1068_vm0 = vcmask 285696  }
 0x1b1   :  { %v845_v58 = vpop.permute.xlu1 %844  ;;  %v835_v59 = vpop.permute.xlu0 %834  ;;  %v828_v54 = vadd.f32 %v826_v6, %v807_v43  ;;  %v819_v55 = vadd.f32 %v817_v45, %v798_v44 }
 0x1b2   :  { %v846_v39 = vrot.slane %v845_v58, 2  ;;  %v836_v41 = vrot.slane %v835_v59, 2 }
 0x1b4   :  { %v847_v50 = vsel %vm837_vm1, %v845_v58, %v846_v39  ;;  %v838_v51 = vsel %vm837_vm1, %v835_v59, %v836_v41  ;;  %vm1089_vm1 = vcmask 277504  }
 0x1b5   :  { %v2072_v60 = vpop.permute.xlu1 %865  ;;  %v2074_v61 = vpop.permute.xlu0 %855  ;;  %v849_v23 = vadd.f32 %v847_v50, %v828_v54  ;;  %v840_v24 = vadd.f32 %v838_v51, %v819_v55 }
 0x1b6   :  { %v867_v46 = vrot.slane %v2072_v60, 2  ;;  %v857_v47 = vrot.slane %v2074_v61, 2 }
 0x1b8   :  { %v868_v56 = vsel %vm858_vm2, %v2072_v60, %v867_v46  ;;  %v859_v57 = vsel %vm858_vm2, %v2074_v61, %v857_v47  ;;  %vm1110_vm2 = vcmask 146432  }
 0x1b9   :  { %v2076_v62 = vpop.permute.xlu1 %886  ;;  %v2078_v63 = vpop.permute.xlu0 %876  ;;  %v870_v61 = vadd.f32 %v868_v56, %v849_v23  ;;  %v861_v30 = vadd.f32 %v859_v57, %v840_v24 }
 0x1ba   :  { %v888_v52 = vrot.slane %v2076_v62, 2  ;;  %v878_v53 = vrot.slane %v2078_v63, 2 }
 0x1bc   :  { %v889_v27 = vsel %vm879_vm3, %v2076_v62, %v888_v52  ;;  %v880_v28 = vsel %vm879_vm3, %v2078_v63, %v878_v53  ;;  %vm1131_vm3 = vcmask 138240  }
 0x1bd   :  { %v2080_v38 = vpop.permute.xlu1 %907  ;;  %v2082_v40 = vpop.permute.xlu0 %897  ;;  %v891_v34 = vadd.f32 %v889_v27, %v870_v61  ;;  %v882_v35 = vadd.f32 %v880_v28, %v861_v30 }
 0x1be   :  { %v909_v21 = vrot.slane %v2080_v38, 2  ;;  %v899_v22 = vrot.slane %v2082_v40, 2 }
 0x1c0   :  { %v910_v17 = vsel %vm900_vm4, %v2080_v38, %v909_v21  ;;  %v901_v31 = vsel %vm900_vm4, %v2082_v40, %v899_v22  ;;  %vm1152_vm4 = vcmask 130048  }
 0x1c1   :  { %v2084_v0 = vpop.permute.xlu1 %928  ;;  %v2086_v2 = vpop.permute.xlu0 %918  ;;  %v912_v40 = vadd.f32 %v910_v17, %v891_v34  ;;  %v903_v41 = vadd.f32 %v901_v31, %v882_v35 }
 0x1c2   :  { %v930_v29 = vrot.slane %v2084_v0, 2  ;;  %v920_v60 = vrot.slane %v2086_v2, 2 }
 0x1c4   :  { %v931_v37 = vsel %vm921_vm5, %v2084_v0, %v930_v29  ;;  %v922_v18 = vsel %vm921_vm5, %v2086_v2, %v920_v60  ;;  %vm1173_vm5 = vcmask 121856  }
 0x1c5   :  { %v2088_v3 = vpop.permute.xlu1 %949  ;;  %v2090_v4 = vpop.permute.xlu0 %939  ;;  %v933_v46 = vadd.f32 %v931_v37, %v912_v40  ;;  %v924_v47 = vadd.f32 %v922_v18, %v903_v41 }
 0x1c6   :  { %v951_v32 = vrot.slane %v2088_v3, 2  ;;  %v941_v33 = vrot.slane %v2090_v4, 2 }
 0x1c8   :  { %v952_v5 = vsel %vm942_vm6, %v2088_v3, %v951_v32  ;;  %v943_v42 = vsel %vm942_vm6, %v2090_v4, %v941_v33  ;;  %vm1194_vm6 = vcmask 113664  }
 0x1c9   :  { %v2092_v7 = vpop.permute.xlu1 %970  ;;  %v2094_v8 = vpop.permute.xlu0 %960  ;;  %v954_v4 = vadd.f32 %v952_v5, %v933_v46  ;;  %v945_v51 = vadd.f32 %v943_v42, %v924_v47 }
 0x1ca   :  { %v972_v39 = vrot.slane %v2092_v7, 2  ;;  %v962_v38 = vrot.slane %v2094_v8, 2 }
 0x1cc   :  { %v973_v43 = vsel %vm963_vm8, %v2092_v7, %v972_v39  ;;  %v964_v44 = vsel %vm963_vm8, %v2094_v8, %v962_v38  ;;  %vm1215_vm8 = vcmask 105472  }
 0x1cd   :  { %v2096_v9 = vpop.permute.xlu1 %991  ;;  %v2098_v11 = vpop.permute.xlu0 %981  ;;  %v975_v56 = vadd.f32 %v973_v43, %v954_v4  ;;  %v966_v57 = vadd.f32 %v964_v44, %v945_v51 }
 0x1ce   :  { %v993_v6 = vrot.slane %v2096_v9, 2  ;;  %v983_v45 = vrot.slane %v2098_v11, 2 }
 0x1d0   :  { %v994_v52 = vsel %vm984_vm9, %v2096_v9, %v993_v6  ;;  %v985_v53 = vsel %vm984_vm9, %v2098_v11, %v983_v45  ;;  %vm1236_vm9 = vcmask 97280  }
 0x1d1   :  { %v2100_v12 = vpop.permute.xlu1 %1012  ;;  %v2102_v13 = vpop.permute.xlu0 %1002  ;;  %v996_v11 = vadd.f32 %v994_v52, %v975_v56  ;;  %v987_v24 = vadd.f32 %v985_v53, %v966_v57 }
 0x1d2   :  { %v1014_v50 = vrot.slane %v2100_v12, 2  ;;  %v1004_v3 = vrot.slane %v2102_v13, 2 }
 0x1d4   :  { %v1015_v21 = vsel %vm1005_vm15, %v2100_v12, %v1014_v50  ;;  %v1006_v22 = vsel %vm1005_vm15, %v2102_v13, %v1004_v3  ;;  %vm1319_vm15 = vcmask 990208  }
 0x1d5   :  { %v2104_v14 = vpop.permute.xlu1 %1033  ;;  %v2106_v15 = vpop.permute.xlu0 %1023  ;;  %v1017_v61 = vadd.f32 %v1015_v21, %v996_v11  ;;  %v1008_v30 = vadd.f32 %v1006_v22, %v987_v24 }
 0x1d6   :  { %v1035_v54 = vrot.slane %v2104_v14, 2  ;;  %v1025_v55 = vrot.slane %v2106_v15, 2 }
 0x1d8   :  { %v1036_v27 = vsel %vm1026_vm10, %v2104_v14, %v1035_v54  ;;  %v1027_v28 = vsel %vm1026_vm10, %v2106_v15, %v1025_v55  ;;  %vm1405_vm10 = vcmask 734212  }
 0x1d9   :  { %v2108_v19 = vpop.permute.xlu1 %1054  ;;  %v2110_v20 = vpop.permute.xlu0 %1044  ;;  %v1038_v15 = vadd.f32 %v1036_v27, %v1017_v61  ;;  %v1029_v33 = vadd.f32 %v1027_v28, %v1008_v30 }
 0x1da   :  { %v1056_v23 = vrot.slane %v2108_v19, 2  ;;  %v1046_v9 = vrot.slane %v2110_v20, 2 }
 0x1dc   :  { %v1057_v17 = vsel %vm1047_vm14, %v2108_v19, %v1056_v23  ;;  %v1048_v31 = vsel %vm1047_vm14, %v2110_v20, %v1046_v9  ;;  %vm1406_vm14 = vmor %vm1405_vm10, %vm1772_vm7 }
 0x1dd   :  { %v2112_v25 = vpop.permute.xlu1 %1075  ;;  %v2114_v26 = vpop.permute.xlu0 %1065  ;;  %v1059_v39 = vadd.f32 %v1057_v17, %v1038_v15  ;;  %v1050_v38 = vadd.f32 %v1048_v31, %v1029_v33 }
 0x1de   :  { %v1077_v29 = vrot.slane %v2112_v25, 2  ;;  %v1067_v60 = vrot.slane %v2114_v26, 2 }
 0x1e0   :  { %v1078_v34 = vsel %vm1068_vm0, %v2112_v25, %v1077_v29  ;;  %v1069_v35 = vsel %vm1068_vm0, %v2114_v26, %v1067_v60  ;;  %vm1408_vm0 = vcmask 779984  }
 0x1e1   :  { %v2116_v36 = vpop.permute.xlu1 %1096  ;;  %v2118_v16 = vpop.permute.xlu0 %1086  ;;  %v1080_v25 = vadd.f32 %v1078_v34, %v1059_v39  ;;  %v1071_v6 = vadd.f32 %v1069_v35, %v1050_v38 }
 0x1e2   :  { %v1098_v32 = vrot.slane %v2116_v36, 2  ;;  %v1088_v14 = vrot.slane %v2118_v16, 2 }
 0x1e4   :  { %v1099_v40 = vsel %vm1089_vm1, %v2116_v36, %v1098_v32  ;;  %v1090_v41 = vsel %vm1089_vm1, %v2118_v16, %v1088_v14 }
 0x1e5   :  { %v2122_v48 = vpop.permute.xlu1 %1117  ;;  %v2124_v49 = vpop.permute.xlu0 %1107  ;;  %v1101_v43 = vadd.f32 %v1099_v40, %v1080_v25  ;;  %v1092_v44 = vadd.f32 %v1090_v41, %v1071_v6 }
 0x1e6   :  { %v1119_v37 = vrot.slane %v2122_v48, 2  ;;  %v1109_v18 = vrot.slane %v2124_v49, 2 }
 0x1e8   :  { %v1120_v26 = vsel %vm1110_vm2, %v2122_v48, %v1119_v37  ;;  %v1111_v45 = vsel %vm1110_vm2, %v2124_v49, %v1109_v18 }
 0x1e9   :  { %v2132_v58 = vpop.permute.xlu1 %1138  ;;  %v2134_v59 = vpop.permute.xlu0 %1128  ;;  %v1122_v48 = vadd.f32 %v1120_v26, %v1101_v43  ;;  %v1113_v52 = vadd.f32 %v1111_v45, %v1092_v44 }
 0x1ea   :  { %v1140_v5 = vrot.slane %v2132_v58, 2  ;;  %v1130_v42 = vrot.slane %v2134_v59, 2 }
 0x1ec   :  { %v1141_v50 = vsel %vm1131_vm3, %v2132_v58, %v1140_v5  ;;  %v1132_v3 = vsel %vm1131_vm3, %v2134_v59, %v1130_v42 }
 0x1ed   :  { %v2144_v62 = vpop.permute.xlu1 %1159  ;;  %v2146_v63 = vpop.permute.xlu0 %1149  ;;  %v1143_v56 = vadd.f32 %v1141_v50, %v1122_v48  ;;  %v1134_v57 = vadd.f32 %v1132_v3, %v1113_v52 }
 0x1ee   :  { %v1161_v46 = vrot.slane %v2144_v62, 2  ;;  %v1151_v47 = vrot.slane %v2146_v63, 2 }
 0x1f0   :  { %v1162_v49 = vsel %vm1152_vm4, %v2144_v62, %v1161_v46  ;;  %v1153_v53 = vsel %vm1152_vm4, %v2146_v63, %v1151_v47 }
 0x1f1   :  { %v2156_v0 = vpop.permute.xlu1 %1180  ;;  %v2158_v2 = vpop.permute.xlu0 %1170  ;;  %v1164_v62 = vadd.f32 %v1162_v49, %v1143_v56  ;;  %v1155_v11 = vadd.f32 %v1153_v53, %v1134_v57 }
 0x1f2   :  { %v1182_v4 = vrot.slane %v2156_v0, 2  ;;  %v1172_v51 = vrot.slane %v2158_v2, 2 }
 0x1f4   :  { %v1183_v21 = vsel %vm1173_vm5, %v2156_v0, %v1182_v4  ;;  %v1174_v22 = vsel %vm1173_vm5, %v2158_v2, %v1172_v51 }
 0x1f5   :  { %v2168_v7 = vpop.permute.xlu1 %1201  ;;  %v2170_v8 = vpop.permute.xlu0 %1191  ;;  %v1185_v29 = vadd.f32 %v1183_v21, %v1164_v62  ;;  %v1176_v60 = vadd.f32 %v1174_v22, %v1155_v11 }
 0x1f6   :  { %v1203_v54 = vrot.slane %v2168_v7, 2  ;;  %v1193_v55 = vrot.slane %v2170_v8, 2 }
 0x1f8   :  { %v1204_v63 = vsel %vm1194_vm6, %v2168_v7, %v1203_v54  ;;  %v1195_v24 = vsel %vm1194_vm6, %v2170_v8, %v1193_v55 }
 0x1f9   :  { %v2180_v12 = vpop.permute.xlu1 %1222  ;;  %v2182_v13 = vpop.permute.xlu0 %1212  ;;  %v1206_v32 = vadd.f32 %v1204_v63, %v1185_v29  ;;  %v1197_v14 = vadd.f32 %v1195_v24, %v1176_v60 }
 0x1fa   :  { %v1224_v23 = vrot.slane %v2180_v12, 2  ;;  %v1214_v9 = vrot.slane %v2182_v13, 2 }
 0x1fc   :  { %v1225_v2 = vsel %vm1215_vm8, %v2180_v12, %v1224_v23  ;;  %v1216_v30 = vsel %vm1215_vm8, %v2182_v13, %v1214_v9 }
 0x1fd   :  { %v1244_v19 = vpop.permute.xlu1 %1243  ;;  %v1234_v20 = vpop.permute.xlu0 %1233  ;;  %v1227_v8 = vadd.f32 %v1225_v2, %v1206_v32  ;;  %v1218_v35 = vadd.f32 %v1216_v30, %v1197_v14 }
 0x1fe   :  { %v1245_v27 = vrot.slane %v1244_v19, 2  ;;  %v1235_v28 = vrot.slane %v1234_v20, 2 }
 0x200   :  { %v1246_v15 = vsel %vm1236_vm9, %v1244_v19, %v1245_v27  ;;  %v1237_v33 = vsel %vm1236_vm9, %v1234_v20, %v1235_v28 }
 0x201   :  { %v1266_v36 = vpop.permute.xlu1 %1265  ;;  %v1256_v16 = vpop.permute.xlu0 %1255  ;;  %v1248_v41 = vadd.f32 %v1246_v15, %v1227_v8  ;;  %v1239_v13 = vadd.f32 %v1237_v33, %v1218_v35 }
 0x202   :  { %v1267_v17 = vrot.slane %v1266_v36, 2  ;;  %v1257_v31 = vrot.slane %v1256_v16, 2 }
 0x204   :  { %v1268_v39 = vsel %vm458_vm11, %v1266_v36, %v1267_v17  ;;  %v1258_v38 = vsel %vm458_vm11, %v1256_v16, %v1257_v31  ;;  %vm1340_vm11 = vcmask 982016  }
 0x205   :  { %v1286_v58 = vpop.permute.xlu1 %1285  ;;  %v1277_v59 = vpop.permute.xlu0 %1276  ;;  %v1270_v25 = vadd.f32 %v1268_v39, %v1248_v41  ;;  %v1260_v6 = vadd.f32 %v1258_v38, %v1239_v13 }
 0x206   :  { %v1287_v7 = vrot.slane %v1286_v58, 2  ;;  %v1278_v34 = vrot.slane %v1277_v59, 2 }
 0x208   :  { %v1288_v5 = vsel %vm479_vm12, %v1286_v58, %v1287_v7  ;;  %v1279_v42 = vsel %vm479_vm12, %v1277_v59, %v1278_v34  ;;  %vm1361_vm12 = vcmask 973824  }
 0x209   :  { %v1306_v61 = vpop.permute.xlu1 %1305  ;;  %v1297_v0 = vpop.permute.xlu0 %1296  ;;  %v1290_v36 = vadd.f32 %v1288_v5, %v1270_v25  ;;  %v1281_v16 = vadd.f32 %v1279_v42, %v1260_v6 }
 0x20a   :  { %v1307_v40 = vrot.slane %v1306_v61, 2  ;;  %v1298_v12 = vrot.slane %v1297_v0, 2 }
 0x20c   :  { %v1308_v46 = vsel %vm500_vm13, %v1306_v61, %v1307_v40  ;;  %v1299_v47 = vsel %vm500_vm13, %v1297_v0, %v1298_v12  ;;  %vm1382_vm13 = vcmask 965632  }
 0x20d   :  { %v1327_v37 = vpop.permute.xlu1 %1326  ;;  %v1317_v18 = vpop.permute.xlu0 %1316  ;;  %v1310_v4 = vadd.f32 %v1308_v46, %v1290_v36  ;;  %v1301_v51 = vadd.f32 %v1299_v47, %v1281_v16 }
 0x20e   :  { %v1328_v19 = vrot.slane %v1327_v37, 2  ;;  %v1318_v20 = vrot.slane %v1317_v18, 2 }
 0x210   :  { %v1329_v50 = vsel %vm1319_vm15, %v1327_v37, %v1328_v19  ;;  %v1320_v3 = vsel %vm1319_vm15, %v1317_v18, %v1318_v20 }
 0x211   :  { %v1348_v26 = vpop.permute.xlu1 %1347  ;;  %v1338_v45 = vpop.permute.xlu0 %1337  ;;  %v1331_v56 = vadd.f32 %v1329_v50, %v1310_v4  ;;  %v1322_v57 = vadd.f32 %v1320_v3, %v1301_v51 }
 0x212   :  { %v1349_v43 = vrot.slane %v1348_v26, 2  ;;  %v1339_v44 = vrot.slane %v1338_v45, 2 }
 0x214   :  { %v1350_v49 = vsel %vm1340_vm11, %v1348_v26, %v1349_v43  ;;  %v1341_v53 = vsel %vm1340_vm11, %v1338_v45, %v1339_v44 }
 0x215   :  { %v1369_v48 = vpop.permute.xlu1 %1368  ;;  %v1359_v52 = vpop.permute.xlu0 %1358  ;;  %v1352_v21 = vadd.f32 %v1350_v49, %v1331_v56  ;;  %v1343_v22 = vadd.f32 %v1341_v53, %v1322_v57 }
 0x216   :  { %v1370_v54 = vrot.slane %v1369_v48, 2  ;;  %v1360_v55 = vrot.slane %v1359_v52, 2 }
 0x218   :  { %v1371_v58 = vsel %vm1361_vm12, %v1369_v48, %v1370_v54  ;;  %v1362_v59 = vsel %vm1361_vm12, %v1359_v52, %v1360_v55 }
 0x219   :  { %v1390_v23 = vpop.permute.xlu1 %1389  ;;  %v1380_v9 = vpop.permute.xlu0 %1379  ;;  %v1373_v63 = vadd.f32 %v1371_v58, %v1352_v21  ;;  %v1364_v24 = vadd.f32 %v1362_v59, %v1343_v22 }
 0x21a   :  { %v1391_v62 = vrot.slane %v1390_v23, 2  ;;  %v1381_v11 = vrot.slane %v1380_v9, 2 }
 0x21c   :  { %v1392_v27 = vsel %vm1382_vm13, %v1390_v23, %v1391_v62  ;;  %v1383_v28 = vsel %vm1382_vm13, %v1380_v9, %v1381_v11 }
 0x21d   :  { %v1394_v29 = vadd.f32 %v1392_v27, %v1373_v63  ;;  %v1385_v60 = vadd.f32 %v1383_v28, %v1364_v24 }
 0x21f   :  { %v1395_v61 = vadd.f32 %v1394_v29, %v1385_v60 }
 0x221   :  { %v1523_v0 = vmul.f32 -1.442695, %v1395_v61 }
 0x223   :  { %1590 = vpow2.f32 %v1523_v0 }
 0x22d   :  { %v1591_v2 = vpop.eup %1590 }
 0x22e   :  { %v1399_v30 = vadd.f32 1.0, %v1591_v2 }
 0x230   :  { %1592 = vrcp.f32 %v1399_v30 }
 0x23a   :  { %v1593_v17 = vpop.eup %1592 }
 0x23b   :  { %1407 = vst.msk [vmem:[#allocation9] sm:$0x3f] %vm1406_vm14, %v1593_v17 }
 0x23c   :  { %1409 = vst.msk [vmem:[#allocation9 + $0x4] sm:$0x3] %vm1408_vm0, %v1659_v10 }
 0x23d   :  { %1637 = shalt.err (!%p1634_p1)
}
 0x23e   :  { %s1638_s28 = scalar_lea.hbm %s2239_s2, 96 }
 0x23f   :  { %p1639_p2 = scmp.ne.s32.totalorder %s2239_s2, %s1638_s28  ;;  %p1642_p3 = scmp.lt.u32.totalorder %s1638_s28, %s2239_s2 }
 0x241   :  { %p1644_p4 = pnand %p1642_p3, %p1639_p2 }
 0x243   :  { %1647 = shalt.err (!%p1644_p4)
}
 0x244   :  { %1419 = dma.vmem_to_hbm [thread:$0]  %s1417_s10, 96, %s2239_s2, [#allocation6]  }
 0x245   :  { %1652 = dma.done.wait [#allocation6], 96  }
 0x246   :  { %1653 = vsyncadd [#allocation6], 4294967200 }
 0x247   :  { %1423 = vsyncpa [#allocation5], 1 }
 0x248   :  { %1424 = vsyncpa [#allocation6], 1 }
 0x249   :  { %1425 = vsyncpa [#allocation7], 1 }

</bundles_post_ra>
